<compile_context>
chip_gen: v5e
topology: v5e:2x2
jax: 0.10.0
libtpu: 0.0.40
codegen_flags: <defaults>
</compile_context>

<pallas_src>
import math
from functools import partial

import jax
import jax.numpy as jnp
from jax.experimental import pallas as pl
from jax.experimental.pallas import tpu as pltpu

_EPS = 1e-5


def _round_up(v, m):
    return (v + m - 1) // m * m


# ----------------------------------------------------------------------------
# Fused ASPP kernel (one (batch, channel-block) tile per grid step)
# ----------------------------------------------------------------------------

def fused_aspp_kernel(x_ref, w_pool_ref, w_full_ref, *rest, taps):
    """x_ref:      (1, H, W, Cin)   bf16, full image (pinned across channel blocks)
       w_pool_ref: (Cin, TC)        f32, pooled branch composed with bottleneck slice
       w_full_ref: (Cin, TC)        bf16, 1x1 branch + all full-overlap atrous center taps
       w_taps_ref: (T, Cin, TC)     bf16, partially overlapping atrous taps (only if taps)
       b_ref:      (1, TC)          f32, total folded bias
       o_ref:      (1, H, W, TC)    f32 output tile
       acc_ref:    (H, W, TC)       f32 VMEM scratch accumulator
       taps: static tuple of (dy, dx, i0, i1, j0, j1) output row/col windows per tap.
    """
    if taps:
        w_taps_ref, b_ref, o_ref, acc_ref = rest
    else:
        b_ref, o_ref, acc_ref = rest
        w_taps_ref = None

    _, H, W, Cin = x_ref.shape
    TC = o_ref.shape[-1]                            # output-channel tile (multiple of 128)

    x = x_ref[0]                                    # (H, W, Cin) bf16, stays on-chip
    x2 = x.reshape(H * W, Cin)

    # pooled branch (f32): global mean -> composed 1x1 -> broadcast over all pixels
    xm = jnp.mean(x2.astype(jnp.float32), axis=0, keepdims=True)                 # (1, Cin)
    pooled = jnp.dot(xm, w_pool_ref[...], preferred_element_type=jnp.float32)    # (1, TC)

    # 1x1 branch + every full-overlap atrous center tap (pre-summed on host): one matmul
    base = jnp.dot(x2, w_full_ref[...], preferred_element_type=jnp.float32)      # (H*W, TC)
    acc_ref[...] = (base + (pooled + b_ref[...])).reshape(H, W, TC)

    # fringe atrous taps: accumulate into the f32 scratch.  Row windows are static slices
    # (full width, full lanes); column shifts are slice + zero-fill concat on the value,
    # so no masked partial stores are ever emitted.
    for t, (dy, dx, i0, i1, _j0, _j1) in enumerate(taps):
        hv = i1 - i0
        xs = x[i0 + dy:i1 + dy, :, :].reshape(hv * W, Cin)
        y = jnp.dot(xs, w_taps_ref[t], preferred_element_type=jnp.float32)
        y = y.reshape(hv, W, TC)
        if dx > 0:      # out[:, j] += y[:, j + dx] for j in [0, W - dx)
            y = jnp.concatenate(
                [y[:, dx:, :], jnp.zeros((hv, dx, TC), jnp.float32)], axis=1)
        elif dx < 0:    # out[:, j] += y[:, j + dx] for j in [-dx, W)
            y = jnp.concatenate(
                [jnp.zeros((hv, -dx, TC), jnp.float32), y[:, :W + dx, :]], axis=1)
        acc_ref[i0:i1, :, :] += y

    # single lane-dense store of the finished tile
    o_ref[...] = acc_ref[...].reshape(o_ref.shape).astype(o_ref.dtype)


def aspp_fused_pallas(x_nhwc, w_pool, w_full, w_taps, b_total, taps,
                      *, tc=128, compute_dtype=jnp.bfloat16):
    N, H, W, Cin = x_nhwc.shape
    Cin_p = w_full.shape[0]
    Cp = w_full.shape[-1]                 # padded output channels (multiple of tc)
    assert Cp % tc == 0
    cb = Cp // tc

    if Cin_p != Cin:                      # zero-pad input channels to match composed weights
        x_nhwc = jnp.pad(x_nhwc, ((0, 0), (0, 0), (0, 0), (0, Cin_p - Cin)))
    x_nhwc = x_nhwc.astype(compute_dtype)

    in_specs = [
        pl.BlockSpec((1, H, W, Cin_p), lambda n, c: (n, 0, 0, 0)),   # full image, resident
        pl.BlockSpec((Cin_p, tc), lambda n, c: (0, c)),              # pooled-branch weight (f32)
        pl.BlockSpec((Cin_p, tc), lambda n, c: (0, c)),              # base weight (bf16)
    ]
    args = [x_nhwc, w_pool, w_full.astype(compute_dtype)]
    if taps:
        T = w_taps.shape[0]
        in_specs.append(pl.BlockSpec((T, Cin_p, tc), lambda n, c: (0, 0, c)))
        args.append(w_taps.astype(compute_dtype))
    in_specs.append(pl.BlockSpec((1, tc), lambda n, c: (0, c)))      # folded bias (f32)
    args.append(b_total)

    # advisory cost estimate so XLA can schedule surrounding ops around the custom call
    hv_rows = sum(i1 - i0 for (_, _, i0, i1, _, _) in taps)
    flops = 2 * N * Cin_p * Cp * (H * W + hv_rows * W) + 2 * N * (H * W * Cin_p + Cin_p * Cp)
    bytes_accessed = (x_nhwc.size * x_nhwc.dtype.itemsize
                      + sum(a.size * a.dtype.itemsize for a in args[1:])
                      + N * H * W * Cp * 4)

    return pl.pallas_call(
        partial(fused_aspp_kernel, taps=taps),
        out_shape=jax.ShapeDtypeStruct((N, H, W, Cp), jnp.float32),
        grid=(N, cb),
        in_specs=in_specs,
        out_specs=pl.BlockSpec((1, H, W, tc), lambda n, c: (n, 0, 0, c)),
        scratch_shapes=[pltpu.VMEM((H, W, tc), jnp.float32)],
        compiler_params=pltpu.CompilerParams(
            dimension_semantics=("parallel", "parallel"),
            vmem_limit_bytes=48 * 1024 * 1024),
        cost_estimate=pl.CostEstimate(flops=int(flops), transcendentals=0,
                                      bytes_accessed=int(bytes_accessed)),
    )(*args)


# ----------------------------------------------------------------------------
# Parameter setup (deterministic synthetic init), BN folding, weight composition
# ----------------------------------------------------------------------------

def init_params(key, features, inner, out_features, dilations):
    ks = iter(jax.random.split(key, 40))

    def conv_w(shape, fan_in):
        return jax.random.normal(next(ks), shape, jnp.float32) / math.sqrt(fan_in)

    def bn(c):
        return dict(
            gamma=jax.random.uniform(next(ks), (c,), minval=0.5, maxval=1.5),
            beta=0.1 * jax.random.normal(next(ks), (c,), jnp.float32),
            mean=0.1 * jax.random.normal(next(ks), (c,), jnp.float32),
            var=jax.random.uniform(next(ks), (c,), minval=0.5, maxval=1.5),
        )

    p = {}
    p['w1'], p['bn1'] = conv_w((features, inner), features), bn(inner)          # pool branch 1x1
    p['w2'], p['bn2'] = conv_w((features, inner), features), bn(inner)          # 1x1 branch
    for i, _d in enumerate(dilations):                                          # 3x3 atrous (HWIO)
        p[f'w{i + 3}'] = conv_w((3, 3, features, inner), 9 * features)
        p[f'bn{i + 3}'] = bn(inner)
    p['wb'], p['bnb'] = conv_w((5 * inner, out_features), 5 * inner), bn(out_features)
    return p


def _fold_bn(w, bn):
    """Fold eval-mode BatchNorm into a bias-free conv: y = conv(x; w*s) + b."""
    scale = bn['gamma'] / jnp.sqrt(bn['var'] + _EPS)          # (Cout,)
    return w * scale, bn['beta'] - bn['mean'] * scale         # (.., Cout), (Cout,)


def compose_aspp_params(params, dilations, H, W, *, lane=128):
    """Compose each (BN-folded) branch conv with its slice of the (BN-folded) bottleneck 1x1.
    Valid because the module has no nonlinearity between them.  Output channels are padded
    to a multiple of `lane` for lane-dense stores; atrous taps that only ever read zero
    padding are dropped (shape-dependent, trace-time guard)."""
    inner = params['w2'].shape[-1]
    Cin = params['w2'].shape[0]
    Cin_p = _round_up(Cin, 8)                                 # sublane-friendly input channels

    wb_eff, bb_eff = _fold_bn(params['wb'], params['bnb'])    # (5*inner, Cout), (Cout,)
    Cout = wb_eff.shape[-1]
    Cp = _round_up(Cout, lane)
    wb_eff = jnp.pad(wb_eff, ((0, 0), (0, Cp - Cout)))        # lane-pad once; all composed
    bb_eff = jnp.pad(bb_eff, (0, Cp - Cout))                  # weights inherit the padding

    def bslice(i):                                            # concat order: pool,1x1,d0,d1,d2
        return wb_eff[i * inner:(i + 1) * inner, :]

    def pad_cin(w):                                           # (Cin, Cp) -> (Cin_p, Cp)
        return jnp.pad(w, ((0, Cin_p - Cin), (0, 0)))

    w1, b1 = _fold_bn(params['w1'], params['bn1'])
    w_pool = pad_cin(w1 @ bslice(0))
    b_total = bb_eff + b1 @ bslice(0)

    w2, b2 = _fold_bn(params['w2'], params['bn2'])
    w_full = w2 @ bslice(1)
    b_total = b_total + b2 @ bslice(1)

    taps, tap_ws = [], []
    for bi, d in enumerate(dilations):
        w3, b3 = _fold_bn(params[f'w{bi + 3}'], params[f'bn{bi + 3}'])   # (3,3,Cin,inner)
        wcomp = jnp.einsum('yxco,ok->yxck', w3, bslice(bi + 2))          # (3,3,Cin,Cp)
        b_total = b_total + b3 @ bslice(bi + 2)
        for ky in range(3):
            for kx in range(3):
                dy, dx = (ky - 1) * d, (kx - 1) * d
                i0, i1 = max(0, -dy), min(H, H - dy)
                j0, j1 = max(0, -dx), min(W, W - dx)
                if i0 >= i1 or j0 >= j1:
                    continue                                  # tap reads only zero padding
                if dy == 0 and dx == 0:
                    w_full = w_full + wcomp[ky, kx]           # full overlap -> fold into base
                else:
                    taps.append((dy, dx, i0, i1, j0, j1))
                    tap_ws.append(pad_cin(wcomp[ky, kx]))

    w_full = pad_cin(w_full)
    w_taps = jnp.stack(tap_ws) if tap_ws else None
    return w_pool, w_full, w_taps, b_total.reshape(1, Cp), tuple(taps)


# ----------------------------------------------------------------------------
# Pure-JAX reference (uncomposed, per-branch, f32) for validation
# ----------------------------------------------------------------------------

def _bn_eval(y, bn):
    return (y - bn['mean']) * (bn['gamma'] / jnp.sqrt(bn['var'] + _EPS)) + bn['beta']


def aspp_forward_ref(x, params, dilations):
    N, H, W, _ = x.shape
    inner = params['w2'].shape[-1]
    xm = jnp.mean(x, axis=(1, 2), keepdims=True)
    f1 = _bn_eval(jnp.einsum('nhwc,co->nhwo', xm, params['w1']), params['bn1'])
    f1 = jnp.broadcast_to(f1, (N, H, W, inner))
    f2 = _bn_eval(jnp.einsum('nhwc,co->nhwo', x, params['w2']), params['bn2'])
    feats = [f1, f2]
    for i, d in enumerate(dilations):
        y = jax.lax.conv_general_dilated(
            x, params[f'w{i + 3}'], window_strides=(1, 1),
            padding=((d, d), (d, d)), rhs_dilation=(d, d),
            dimension_numbers=('NHWC', 'HWIO', 'NHWC'))
        feats.append(_bn_eval(y, params[f'bn{i + 3}']))
    cat = jnp.concatenate(feats, axis=-1)
    return _bn_eval(jnp.einsum('nhwc,co->nhwo', cat, params['wb']), params['bnb'])


# ----------------------------------------------------------------------------
# Main
# ----------------------------------------------------------------------------

if __name__ == "__main__":
    key = jax.random.PRNGKey(0)
    kx, kp = jax.random.split(key)

    # Small shapes consistent with the module (features -> inner -> out).
    # out_features=192 pads to 256 -> two 128-wide channel blocks, so the channel-tiled
    # grid path (and the lane-padding slice) are both exercised.
    N, C, H, W = 2, 8, 16, 16
    inner, out_features = 16, 192
    dilations = (12, 24, 36)          # module defaults; padding == dilation keeps spatial size

    x_nchw = jax.random.normal(kx, (N, C, H, W), jnp.float32)   # PyTorch-style input
    x_nhwc = jnp.transpose(x_nchw, (0, 2, 3, 1))                # kernel layout

    params = init_params(kp, C, inner, out_features, dilations)
    w_pool, w_full, w_taps, b_total, taps = compose_aspp_params(params, dilations, H, W)

    out_p = aspp_fused_pallas(x_nhwc, w_pool, w_full, w_taps, b_total, taps)
    out_p = jax.block_until_ready(out_p)
    out = out_p[..., :out_features]                             # drop lane padding

    ref = aspp_forward_ref(x_nhwc, params, dilations)
    assert out.shape == (N, H, W, out_features), out.shape
    max_err = float(jnp.max(jnp.abs(out - ref)))
    scale = float(jnp.max(jnp.abs(ref)))
    tol = 2e-2 + 2e-2 * scale                                   # bf16 inputs/weights, f32 accum
    assert max_err <= tol, f"mismatch vs reference: abs={max_err}, tol={tol}"

    print("KERNEL_OK")
</pallas_src>

<mosaic_0001>
module attributes {stable_mosaic.version = 11 : i64} {
  func.func @fused_aspp_kernel(%arg0: i32, %arg1: i32, %arg2: memref<1x16x16x8xbf16, #tpu.memory_space<vmem>>, %arg3: memref<8x128xf32, #tpu.memory_space<vmem>>, %arg4: memref<8x128xbf16, #tpu.memory_space<vmem>>, %arg5: memref<8x8x128xbf16, #tpu.memory_space<vmem>>, %arg6: memref<1x128xf32, #tpu.memory_space<vmem>>, %arg7: memref<1x16x16x128xf32, #tpu.memory_space<vmem>>, %arg8: memref<16x16x128xf32, #tpu.memory_space<vmem>>) attributes {dimension_semantics = [#tpu.dimension_semantics<parallel>, #tpu.dimension_semantics<parallel>], iteration_bounds = array<i64: 2, 2>, scalar_prefetch = 0 : i64, scratch_operands = 1 : i64, tpu.core_type = #tpu.core_type<tc>, window_params = [{transform_indices = @transform_0, window_bounds = array<i64: 1, 16, 16, 8>}, {transform_indices = @transform_1, window_bounds = array<i64: 8, 128>}, {transform_indices = @transform_2, window_bounds = array<i64: 8, 128>}, {transform_indices = @transform_3, window_bounds = array<i64: 8, 8, 128>}, {transform_indices = @transform_4, window_bounds = array<i64: 1, 128>}, {transform_indices = @transform_5, window_bounds = array<i64: 1, 16, 16, 128>}]} {
    %c0 = arith.constant 0 : index
    %c0_0 = arith.constant 0 : index
    %c0_1 = arith.constant 0 : index
    %c0_2 = arith.constant 0 : index
    %0 = vector.load %arg2[%c0, %c0_0, %c0_1, %c0_2] : memref<1x16x16x8xbf16, #tpu.memory_space<vmem>>, vector<1x16x16x8xbf16>
    %1 = vector.shape_cast %0 : vector<1x16x16x8xbf16> to vector<16x16x8xbf16>
    %2 = vector.shape_cast %1 : vector<16x16x8xbf16> to vector<256x8xbf16>
    %3 = arith.extf %2 : vector<256x8xbf16> to vector<256x8xf32>
    %cst = arith.constant dense<0.000000e+00> : vector<8xf32>
    %4 = vector.multi_reduction <add>, %3, %cst [0] : vector<256x8xf32> to vector<8xf32>
    %5 = vector.shape_cast %4 : vector<8xf32> to vector<1x8xf32>
    %cst_3 = arith.constant 2.560000e+02 : f32
    %6 = vector.broadcast %cst_3 : f32 to vector<1x8xf32>
    %7 = arith.divf %5, %6 : vector<1x8xf32>
    %c0_4 = arith.constant 0 : index
    %c0_5 = arith.constant 0 : index
    %8 = vector.load %arg3[%c0_4, %c0_5] : memref<8x128xf32, #tpu.memory_space<vmem>>, vector<8x128xf32>
    %cst_6 = arith.constant dense<0.000000e+00> : vector<1x128xf32>
    %9 = tpu.matmul %7, %8, %cst_6 {dimension_numbers = #tpu.dot_dimension_numbers<[1], [0], [0], [1], [0, 0, 1, 1], [], []>} : vector<1x8xf32>, vector<8x128xf32>, vector<1x128xf32> -> vector<1x128xf32>
    %c0_7 = arith.constant 0 : index
    %c0_8 = arith.constant 0 : index
    %10 = vector.load %arg4[%c0_7, %c0_8] : memref<8x128xbf16, #tpu.memory_space<vmem>>, vector<8x128xbf16>
    %cst_9 = arith.constant dense<0.000000e+00> : vector<256x128xf32>
    %11 = tpu.matmul %2, %10, %cst_9 {dimension_numbers = #tpu.dot_dimension_numbers<[1], [0], [0], [1], [0, 0, 1, 1], [], []>} : vector<256x8xbf16>, vector<8x128xbf16>, vector<256x128xf32> -> vector<256x128xf32>
    %c0_10 = arith.constant 0 : index
    %c0_11 = arith.constant 0 : index
    %12 = vector.load %arg6[%c0_10, %c0_11] : memref<1x128xf32, #tpu.memory_space<vmem>>, vector<1x128xf32>
    %13 = arith.addf %9, %12 : vector<1x128xf32>
    %14 = vector.broadcast %13 : vector<1x128xf32> to vector<256x128xf32>
    %15 = arith.addf %11, %14 : vector<256x128xf32>
    %16 = vector.shape_cast %15 : vector<256x128xf32> to vector<16x16x128xf32>
    %c0_12 = arith.constant 0 : index
    %c0_13 = arith.constant 0 : index
    %c0_14 = arith.constant 0 : index
    %17 = vector.load %arg8[%c0_12, %c0_13, %c0_14] : memref<16x16x128xf32, #tpu.memory_space<vmem>>, vector<16x16x128xf32>
    tpu.vector_store %arg8[%c0_12, %c0_13, %c0_14], %16 {strides = array<i32>} : memref<16x16x128xf32, #tpu.memory_space<vmem>>, vector<16x16x128xf32>,
    %18 = vector.extract_strided_slice %1 {offsets = [0, 0, 0], sizes = [4, 16, 8], strides = [1, 1, 1]} : vector<16x16x8xbf16> to vector<4x16x8xbf16>
    %19 = vector.shape_cast %18 : vector<4x16x8xbf16> to vector<64x8xbf16>
    %c0_15 = arith.constant 0 : index
    %c0_16 = arith.constant 0 : index
    %c0_17 = arith.constant 0 : index
    %20 = vector.load %arg5[%c0_15, %c0_16, %c0_17] : memref<8x8x128xbf16, #tpu.memory_space<vmem>>, vector<1x8x128xbf16>
    %21 = vector.shape_cast %20 : vector<1x8x128xbf16> to vector<8x128xbf16>
    %cst_18 = arith.constant dense<0.000000e+00> : vector<64x128xf32>
    %22 = tpu.matmul %19, %21, %cst_18 {dimension_numbers = #tpu.dot_dimension_numbers<[1], [0], [0], [1], [0, 0, 1, 1], [], []>} : vector<64x8xbf16>, vector<8x128xbf16>, vector<64x128xf32> -> vector<64x128xf32>
    %23 = vector.shape_cast %22 : vector<64x128xf32> to vector<4x16x128xf32>
    %cst_19 = arith.constant 0.000000e+00 : f32
    %24 = vector.broadcast %cst_19 : f32 to vector<4x12x128xf32>
    %25 = vector.extract_strided_slice %23 {offsets = [0, 0, 0], sizes = [4, 4, 128], strides = [1, 1, 1]} : vector<4x16x128xf32> to vector<4x4x128xf32>
    %26 = tpu.concatenate %24, %25 in 1 : vector<4x12x128xf32>, vector<4x4x128xf32> -> vector<4x16x128xf32>
    %c12 = arith.constant 12 : index
    %c0_20 = arith.constant 0 : index
    %c0_21 = arith.constant 0 : index
    %27 = vector.load %arg8[%c12, %c0_20, %c0_21] : memref<16x16x128xf32, #tpu.memory_space<vmem>>, vector<4x16x128xf32>
    %28 = arith.addf %27, %26 : vector<4x16x128xf32>
    %c12_22 = arith.constant 12 : index
    %c0_23 = arith.constant 0 : index
    %c0_24 = arith.constant 0 : index
    %29 = vector.load %arg8[%c12_22, %c0_23, %c0_24] : memref<16x16x128xf32, #tpu.memory_space<vmem>>, vector<4x16x128xf32>
    tpu.vector_store %arg8[%c12_22, %c0_23, %c0_24], %28 {strides = array<i32>} : memref<16x16x128xf32, #tpu.memory_space<vmem>>, vector<4x16x128xf32>,
    %30 = vector.extract_strided_slice %1 {offsets = [0, 0, 0], sizes = [4, 16, 8], strides = [1, 1, 1]} : vector<16x16x8xbf16> to vector<4x16x8xbf16>
    %31 = vector.shape_cast %30 : vector<4x16x8xbf16> to vector<64x8xbf16>
    %c1 = arith.constant 1 : index
    %c0_25 = arith.constant 0 : index
    %c0_26 = arith.constant 0 : index
    %32 = vector.load %arg5[%c1, %c0_25, %c0_26] : memref<8x8x128xbf16, #tpu.memory_space<vmem>>, vector<1x8x128xbf16>
    %33 = vector.shape_cast %32 : vector<1x8x128xbf16> to vector<8x128xbf16>
    %cst_27 = arith.constant dense<0.000000e+00> : vector<64x128xf32>
    %34 = tpu.matmul %31, %33, %cst_27 {dimension_numbers = #tpu.dot_dimension_numbers<[1], [0], [0], [1], [0, 0, 1, 1], [], []>} : vector<64x8xbf16>, vector<8x128xbf16>, vector<64x128xf32> -> vector<64x128xf32>
    %35 = vector.shape_cast %34 : vector<64x128xf32> to vector<4x16x128xf32>
    %c12_28 = arith.constant 12 : index
    %c0_29 = arith.constant 0 : index
    %c0_30 = arith.constant 0 : index
    %36 = vector.load %arg8[%c12_28, %c0_29, %c0_30] : memref<16x16x128xf32, #tpu.memory_space<vmem>>, vector<4x16x128xf32>
    %37 = arith.addf %36, %35 : vector<4x16x128xf32>
    %c12_31 = arith.constant 12 : index
    %c0_32 = arith.constant 0 : index
    %c0_33 = arith.constant 0 : index
    %38 = vector.load %arg8[%c12_31, %c0_32, %c0_33] : memref<16x16x128xf32, #tpu.memory_space<vmem>>, vector<4x16x128xf32>
    tpu.vector_store %arg8[%c12_31, %c0_32, %c0_33], %37 {strides = array<i32>} : memref<16x16x128xf32, #tpu.memory_space<vmem>>, vector<4x16x128xf32>,
    %39 = vector.extract_strided_slice %1 {offsets = [0, 0, 0], sizes = [4, 16, 8], strides = [1, 1, 1]} : vector<16x16x8xbf16> to vector<4x16x8xbf16>
    %40 = vector.shape_cast %39 : vector<4x16x8xbf16> to vector<64x8xbf16>
    %c2 = arith.constant 2 : index
    %c0_34 = arith.constant 0 : index
    %c0_35 = arith.constant 0 : index
    %41 = vector.load %arg5[%c2, %c0_34, %c0_35] : memref<8x8x128xbf16, #tpu.memory_space<vmem>>, vector<1x8x128xbf16>
    %42 = vector.shape_cast %41 : vector<1x8x128xbf16> to vector<8x128xbf16>
    %cst_36 = arith.constant dense<0.000000e+00> : vector<64x128xf32>
    %43 = tpu.matmul %40, %42, %cst_36 {dimension_numbers = #tpu.dot_dimension_numbers<[1], [0], [0], [1], [0, 0, 1, 1], [], []>} : vector<64x8xbf16>, vector<8x128xbf16>, vector<64x128xf32> -> vector<64x128xf32>
    %44 = vector.shape_cast %43 : vector<64x128xf32> to vector<4x16x128xf32>
    %45 = vector.extract_strided_slice %44 {offsets = [0, 12, 0], sizes = [4, 4, 128], strides = [1, 1, 1]} : vector<4x16x128xf32> to vector<4x4x128xf32>
    %cst_37 = arith.constant 0.000000e+00 : f32
    %46 = vector.broadcast %cst_37 : f32 to vector<4x12x128xf32>
    %47 = tpu.concatenate %45, %46 in 1 : vector<4x4x128xf32>, vector<4x12x128xf32> -> vector<4x16x128xf32>
    %c12_38 = arith.constant 12 : index
    %c0_39 = arith.constant 0 : index
    %c0_40 = arith.constant 0 : index
    %48 = vector.load %arg8[%c12_38, %c0_39, %c0_40] : memref<16x16x128xf32, #tpu.memory_space<vmem>>, vector<4x16x128xf32>
    %49 = arith.addf %48, %47 : vector<4x16x128xf32>
    %c12_41 = arith.constant 12 : index
    %c0_42 = arith.constant 0 : index
    %c0_43 = arith.constant 0 : index
    %50 = vector.load %arg8[%c12_41, %c0_42, %c0_43] : memref<16x16x128xf32, #tpu.memory_space<vmem>>, vector<4x16x128xf32>
    tpu.vector_store %arg8[%c12_41, %c0_42, %c0_43], %49 {strides = array<i32>} : memref<16x16x128xf32, #tpu.memory_space<vmem>>, vector<4x16x128xf32>,
    %51 = vector.shape_cast %1 : vector<16x16x8xbf16> to vector<256x8xbf16>
    %c3 = arith.constant 3 : index
    %c0_44 = arith.constant 0 : index
    %c0_45 = arith.constant 0 : index
    %52 = vector.load %arg5[%c3, %c0_44, %c0_45] : memref<8x8x128xbf16, #tpu.memory_space<vmem>>, vector<1x8x128xbf16>
    %53 = vector.shape_cast %52 : vector<1x8x128xbf16> to vector<8x128xbf16>
    %cst_46 = arith.constant dense<0.000000e+00> : vector<256x128xf32>
    %54 = tpu.matmul %51, %53, %cst_46 {dimension_numbers = #tpu.dot_dimension_numbers<[1], [0], [0], [1], [0, 0, 1, 1], [], []>} : vector<256x8xbf16>, vector<8x128xbf16>, vector<256x128xf32> -> vector<256x128xf32>
    %55 = vector.shape_cast %54 : vector<256x128xf32> to vector<16x16x128xf32>
    %cst_47 = arith.constant 0.000000e+00 : f32
    %56 = vector.broadcast %cst_47 : f32 to vector<16x12x128xf32>
    %57 = vector.extract_strided_slice %55 {offsets = [0, 0, 0], sizes = [16, 4, 128], strides = [1, 1, 1]} : vector<16x16x128xf32> to vector<16x4x128xf32>
    %58 = tpu.concatenate %56, %57 in 1 : vector<16x12x128xf32>, vector<16x4x128xf32> -> vector<16x16x128xf32>
    %c0_48 = arith.constant 0 : index
    %c0_49 = arith.constant 0 : index
    %c0_50 = arith.constant 0 : index
    %59 = vector.load %arg8[%c0_48, %c0_49, %c0_50] : memref<16x16x128xf32, #tpu.memory_space<vmem>>, vector<16x16x128xf32>
    %60 = arith.addf %59, %58 : vector<16x16x128xf32>
    %c0_51 = arith.constant 0 : index
    %c0_52 = arith.constant 0 : index
    %c0_53 = arith.constant 0 : index
    %61 = vector.load %arg8[%c0_51, %c0_52, %c0_53] : memref<16x16x128xf32, #tpu.memory_space<vmem>>, vector<16x16x128xf32>
    tpu.vector_store %arg8[%c0_51, %c0_52, %c0_53], %60 {strides = array<i32>} : memref<16x16x128xf32, #tpu.memory_space<vmem>>, vector<16x16x128xf32>,
    %62 = vector.shape_cast %1 : vector<16x16x8xbf16> to vector<256x8xbf16>
    %c4 = arith.constant 4 : index
    %c0_54 = arith.constant 0 : index
    %c0_55 = arith.constant 0 : index
    %63 = vector.load %arg5[%c4, %c0_54, %c0_55] : memref<8x8x128xbf16, #tpu.memory_space<vmem>>, vector<1x8x128xbf16>
    %64 = vector.shape_cast %63 : vector<1x8x128xbf16> to vector<8x128xbf16>
    %cst_56 = arith.constant dense<0.000000e+00> : vector<256x128xf32>
    %65 = tpu.matmul %62, %64, %cst_56 {dimension_numbers = #tpu.dot_dimension_numbers<[1], [0], [0], [1], [0, 0, 1, 1], [], []>} : vector<256x8xbf16>, vector<8x128xbf16>, vector<256x128xf32> -> vector<256x128xf32>
    %66 = vector.shape_cast %65 : vector<256x128xf32> to vector<16x16x128xf32>
    %67 = vector.extract_strided_slice %66 {offsets = [0, 12, 0], sizes = [16, 4, 128], strides = [1, 1, 1]} : vector<16x16x128xf32> to vector<16x4x128xf32>
    %cst_57 = arith.constant 0.000000e+00 : f32
    %68 = vector.broadcast %cst_57 : f32 to vector<16x12x128xf32>
    %69 = tpu.concatenate %67, %68 in 1 : vector<16x4x128xf32>, vector<16x12x128xf32> -> vector<16x16x128xf32>
    %c0_58 = arith.constant 0 : index
    %c0_59 = arith.constant 0 : index
    %c0_60 = arith.constant 0 : index
    %70 = vector.load %arg8[%c0_58, %c0_59, %c0_60] : memref<16x16x128xf32, #tpu.memory_space<vmem>>, vector<16x16x128xf32>
    %71 = arith.addf %70, %69 : vector<16x16x128xf32>
    %c0_61 = arith.constant 0 : index
    %c0_62 = arith.constant 0 : index
    %c0_63 = arith.constant 0 : index
    %72 = vector.load %arg8[%c0_61, %c0_62, %c0_63] : memref<16x16x128xf32, #tpu.memory_space<vmem>>, vector<16x16x128xf32>
    tpu.vector_store %arg8[%c0_61, %c0_62, %c0_63], %71 {strides = array<i32>} : memref<16x16x128xf32, #tpu.memory_space<vmem>>, vector<16x16x128xf32>,
    %73 = vector.extract_strided_slice %1 {offsets = [12, 0, 0], sizes = [4, 16, 8], strides = [1, 1, 1]} : vector<16x16x8xbf16> to vector<4x16x8xbf16>
    %74 = vector.shape_cast %73 : vector<4x16x8xbf16> to vector<64x8xbf16>
    %c5 = arith.constant 5 : index
    %c0_64 = arith.constant 0 : index
    %c0_65 = arith.constant 0 : index
    %75 = vector.load %arg5[%c5, %c0_64, %c0_65] : memref<8x8x128xbf16, #tpu.memory_space<vmem>>, vector<1x8x128xbf16>
    %76 = vector.shape_cast %75 : vector<1x8x128xbf16> to vector<8x128xbf16>
    %cst_66 = arith.constant dense<0.000000e+00> : vector<64x128xf32>
    %77 = tpu.matmul %74, %76, %cst_66 {dimension_numbers = #tpu.dot_dimension_numbers<[1], [0], [0], [1], [0, 0, 1, 1], [], []>} : vector<64x8xbf16>, vector<8x128xbf16>, vector<64x128xf32> -> vector<64x128xf32>
    %78 = vector.shape_cast %77 : vector<64x128xf32> to vector<4x16x128xf32>
    %cst_67 = arith.constant 0.000000e+00 : f32
    %79 = vector.broadcast %cst_67 : f32 to vector<4x12x128xf32>
    %80 = vector.extract_strided_slice %78 {offsets = [0, 0, 0], sizes = [4, 4, 128], strides = [1, 1, 1]} : vector<4x16x128xf32> to vector<4x4x128xf32>
    %81 = tpu.concatenate %79, %80 in 1 : vector<4x12x128xf32>, vector<4x4x128xf32> -> vector<4x16x128xf32>
    %c0_68 = arith.constant 0 : index
    %c0_69 = arith.constant 0 : index
    %c0_70 = arith.constant 0 : index
    %82 = vector.load %arg8[%c0_68, %c0_69, %c0_70] : memref<16x16x128xf32, #tpu.memory_space<vmem>>, vector<4x16x128xf32>
    %83 = arith.addf %82, %81 : vector<4x16x128xf32>
    %c0_71 = arith.constant 0 : index
    %c0_72 = arith.constant 0 : index
    %c0_73 = arith.constant 0 : index
    %84 = vector.load %arg8[%c0_71, %c0_72, %c0_73] : memref<16x16x128xf32, #tpu.memory_space<vmem>>, vector<4x16x128xf32>
    tpu.vector_store %arg8[%c0_71, %c0_72, %c0_73], %83 {strides = array<i32>} : memref<16x16x128xf32, #tpu.memory_space<vmem>>, vector<4x16x128xf32>,
    %85 = vector.extract_strided_slice %1 {offsets = [12, 0, 0], sizes = [4, 16, 8], strides = [1, 1, 1]} : vector<16x16x8xbf16> to vector<4x16x8xbf16>
    %86 = vector.shape_cast %85 : vector<4x16x8xbf16> to vector<64x8xbf16>
    %c6 = arith.constant 6 : index
    %c0_74 = arith.constant 0 : index
    %c0_75 = arith.constant 0 : index
    %87 = vector.load %arg5[%c6, %c0_74, %c0_75] : memref<8x8x128xbf16, #tpu.memory_space<vmem>>, vector<1x8x128xbf16>
    %88 = vector.shape_cast %87 : vector<1x8x128xbf16> to vector<8x128xbf16>
    %cst_76 = arith.constant dense<0.000000e+00> : vector<64x128xf32>
    %89 = tpu.matmul %86, %88, %cst_76 {dimension_numbers = #tpu.dot_dimension_numbers<[1], [0], [0], [1], [0, 0, 1, 1], [], []>} : vector<64x8xbf16>, vector<8x128xbf16>, vector<64x128xf32> -> vector<64x128xf32>
    %90 = vector.shape_cast %89 : vector<64x128xf32> to vector<4x16x128xf32>
    %c0_77 = arith.constant 0 : index
    %c0_78 = arith.constant 0 : index
    %c0_79 = arith.constant 0 : index
    %91 = vector.load %arg8[%c0_77, %c0_78, %c0_79] : memref<16x16x128xf32, #tpu.memory_space<vmem>>, vector<4x16x128xf32>
    %92 = arith.addf %91, %90 : vector<4x16x128xf32>
    %c0_80 = arith.constant 0 : index
    %c0_81 = arith.constant 0 : index
    %c0_82 = arith.constant 0 : index
    %93 = vector.load %arg8[%c0_80, %c0_81, %c0_82] : memref<16x16x128xf32, #tpu.memory_space<vmem>>, vector<4x16x128xf32>
    tpu.vector_store %arg8[%c0_80, %c0_81, %c0_82], %92 {strides = array<i32>} : memref<16x16x128xf32, #tpu.memory_space<vmem>>, vector<4x16x128xf32>,
    %94 = vector.extract_strided_slice %1 {offsets = [12, 0, 0], sizes = [4, 16, 8], strides = [1, 1, 1]} : vector<16x16x8xbf16> to vector<4x16x8xbf16>
    %95 = vector.shape_cast %94 : vector<4x16x8xbf16> to vector<64x8xbf16>
    %c7 = arith.constant 7 : index
    %c0_83 = arith.constant 0 : index
    %c0_84 = arith.constant 0 : index
    %96 = vector.load %arg5[%c7, %c0_83, %c0_84] : memref<8x8x128xbf16, #tpu.memory_space<vmem>>, vector<1x8x128xbf16>
    %97 = vector.shape_cast %96 : vector<1x8x128xbf16> to vector<8x128xbf16>
    %cst_85 = arith.constant dense<0.000000e+00> : vector<64x128xf32>
    %98 = tpu.matmul %95, %97, %cst_85 {dimension_numbers = #tpu.dot_dimension_numbers<[1], [0], [0], [1], [0, 0, 1, 1], [], []>} : vector<64x8xbf16>, vector<8x128xbf16>, vector<64x128xf32> -> vector<64x128xf32>
    %99 = vector.shape_cast %98 : vector<64x128xf32> to vector<4x16x128xf32>
    %100 = vector.extract_strided_slice %99 {offsets = [0, 12, 0], sizes = [4, 4, 128], strides = [1, 1, 1]} : vector<4x16x128xf32> to vector<4x4x128xf32>
    %cst_86 = arith.constant 0.000000e+00 : f32
    %101 = vector.broadcast %cst_86 : f32 to vector<4x12x128xf32>
    %102 = tpu.concatenate %100, %101 in 1 : vector<4x4x128xf32>, vector<4x12x128xf32> -> vector<4x16x128xf32>
    %c0_87 = arith.constant 0 : index
    %c0_88 = arith.constant 0 : index
    %c0_89 = arith.constant 0 : index
    %103 = vector.load %arg8[%c0_87, %c0_88, %c0_89] : memref<16x16x128xf32, #tpu.memory_space<vmem>>, vector<4x16x128xf32>
    %104 = arith.addf %103, %102 : vector<4x16x128xf32>
    %c0_90 = arith.constant 0 : index
    %c0_91 = arith.constant 0 : index
    %c0_92 = arith.constant 0 : index
    %105 = vector.load %arg8[%c0_90, %c0_91, %c0_92] : memref<16x16x128xf32, #tpu.memory_space<vmem>>, vector<4x16x128xf32>
    tpu.vector_store %arg8[%c0_90, %c0_91, %c0_92], %104 {strides = array<i32>} : memref<16x16x128xf32, #tpu.memory_space<vmem>>, vector<4x16x128xf32>,
    %c0_93 = arith.constant 0 : index
    %c0_94 = arith.constant 0 : index
    %c0_95 = arith.constant 0 : index
    %106 = vector.load %arg8[%c0_93, %c0_94, %c0_95] : memref<16x16x128xf32, #tpu.memory_space<vmem>>, vector<16x16x128xf32>
    %107 = vector.shape_cast %106 : vector<16x16x128xf32> to vector<1x16x16x128xf32>
    %c0_96 = arith.constant 0 : index
    %c0_97 = arith.constant 0 : index
    %c0_98 = arith.constant 0 : index
    %c0_99 = arith.constant 0 : index
    %108 = vector.load %arg7[%c0_96, %c0_97, %c0_98, %c0_99] : memref<1x16x16x128xf32, #tpu.memory_space<vmem>>, vector<1x16x16x128xf32>
    tpu.vector_store %arg7[%c0_96, %c0_97, %c0_98, %c0_99], %107 {strides = array<i32>} : memref<1x16x16x128xf32, #tpu.memory_space<vmem>>, vector<1x16x16x128xf32>,
    return
  }
  func.func @transform_0(%arg0: i32, %arg1: i32) -> (i32, i32, i32, i32) {
    %c0_i32 = arith.constant 0 : i32
    %c0_i32_0 = arith.constant 0 : i32
    %c0_i32_1 = arith.constant 0 : i32
    %c0_i32_2 = arith.constant 0 : i32
    return %arg0, %c0_i32, %c0_i32_0, %c0_i32_1 : i32, i32, i32, i32
  }
  func.func @transform_1(%arg0: i32, %arg1: i32) -> (i32, i32) {
    %c0_i32 = arith.constant 0 : i32
    %c0_i32_0 = arith.constant 0 : i32
    return %c0_i32, %arg1 : i32, i32
  }
  func.func @transform_2(%arg0: i32, %arg1: i32) -> (i32, i32) {
    %c0_i32 = arith.constant 0 : i32
    %c0_i32_0 = arith.constant 0 : i32
    return %c0_i32, %arg1 : i32, i32
  }
  func.func @transform_3(%arg0: i32, %arg1: i32) -> (i32, i32, i32) {
    %c0_i32 = arith.constant 0 : i32
    %c0_i32_0 = arith.constant 0 : i32
    %c0_i32_1 = arith.constant 0 : i32
    return %c0_i32, %c0_i32_0, %arg1 : i32, i32, i32
  }
  func.func @transform_4(%arg0: i32, %arg1: i32) -> (i32, i32) {
    %c0_i32 = arith.constant 0 : i32
    %c0_i32_0 = arith.constant 0 : i32
    return %c0_i32, %arg1 : i32, i32
  }
  func.func @transform_5(%arg0: i32, %arg1: i32) -> (i32, i32, i32, i32) {
    %c0_i32 = arith.constant 0 : i32
    %c0_i32_0 = arith.constant 0 : i32
    %c0_i32_1 = arith.constant 0 : i32
    return %arg0, %c0_i32, %c0_i32_0, %arg1 : i32, i32, i32, i32
  }
}

</mosaic_0001>

<bundles_post_ra>
// kernel: tpu_custom_call.1
= control target key start
LH: loop header
LB: loop body
LE: loop exit
PB: predicated region body
PF: predicated region fallthrough
CT: control target
= control target key end

     0   :  { %s2978_s0 = inlined_call_operand.vmem [shape: bf16[2,16,16,8], index: 0, kind: input, shape index: {}]   ;;  %s2979_s1 = inlined_call_operand.vmem [shape: f32[8,256], index: 1, kind: input, shape index: {}]   ;;  %s2980_s2 = inlined_call_operand.vmem [shape: bf16[8,256], index: 2, kind: input, shape index: {}]   ;;  %s2981_s3 = inlined_call_operand.vmem [shape: bf16[8,8,256], index: 3, kind: input, shape index: {}]   ;;  %s2982_s4 = inlined_call_operand.vmem [shape: f32[1,256], index: 4, kind: input, shape index: {}]   ;;  %s2983_s5 = inlined_call_operand.hbm [shape: f32[2,16,16,256], index: 5, kind: output, shape index: {}]  }
   0x1   :  { %2984 = sst [smem:[#allocation7_spill]] %s2981_s3 }
   0x2   :  { %10 = vsyncpa [#allocation5], 0 }
   0x3   :  { %12 = vsyncpa [#allocation5 + $0x1], 0  ;;  %s2298_s18 = smov 0   ;;  %s2300_s19 = smov 0  }
   0x4   :  { %s2302_s20 = smov 0   ;;  %s2304_s21 = smov 0  }
   0x5   :  { %s2306_s22 = smov 0   ;;  %s2308_s23 = smov 0  }
   0x6   :  { %s2310_s24 = smov 0   ;;  %s2312_s25 = smov 0  }
   0x7   :  { %s2314_s26 = smov 0   ;;  %s2316_s27 = smov 0  }
   0x8 LB: > { %s1878_s28 = sadd.s32 4294967295, %s2262_s27   ;;  %s1879_s29 = sadd.s32 4294967294, %s2262_s27   ;;  %s2262_s27 = sphi %s2316_s27, %s18_s27   ;;  %s2258_s26 = sphi %s2314_s26, %s2997_s26   ;;  %s2254_s25 = sphi %s2312_s25, %s2996_s25   ;;  %s2250_s24 = sphi %s2310_s24, %s2995_s24   ;;  %s2246_s23 = sphi %s2308_s23, %s2994_s23   ;;  %s2242_s22 = sphi %s2306_s22, %s2993_s22   ;;  %s2238_s21 = sphi %s2304_s21, %s2992_s21   ;;  %s2234_s20 = sphi %s2302_s20, %s2991_s20   ;;  %s2230_s19 = sphi %s2300_s19, %s2990_s19   ;;  %s2226_s18 = sphi %s2298_s18, %s2989_s18  }
   0x9   : > { %s27_s30 = sadd.s32 1, %s2254_s25  ;;  %s30_s6 = sadd.s32 1, %s2258_s26 }
   0xa   : > { %p28_p0 = scmp.ge.s32.totalorder %s27_s30, 2  ;;  %s115_s7 = sadd.s32 1, %s2242_s22 }
   0xb   : > { %p122_p1 = scmp.ne.s32.totalorder %s2242_s22, %s2238_s21  ;;  %p123_p2 = scmp.eq.s32.totalorder %s2262_s27, 0 }
   0xc   : > { %s2999_s30 = smov (%p28_p0, %s27_s30), 0  ;;  %s3001_s6 = smov (!%p28_p0, %s30_s6), %s2258_s26 }
   0xd   : > { %s112_s8 = ssub.s32 %s2254_s25, %s2999_s30  ;;  %p2361_p3 = por %p123_p2, %p122_p1 }
   0xe   : > { %p32_p4 = scmp.ge.s32.totalorder %s3001_s6, 2  ;;  %p113_p5 = scmp.eq.s32.totalorder %s112_s8, 0 }
   0xf   : > { %s169_s10 = sadd.s32 1, %s2234_s20  ;;  %p179_p6 = scmp.ne.s32.totalorder %s2234_s20, %s2230_s19 }
  0x10   : > { %s3003_s6 = smov (%p32_p4, %s3001_s6), 0  ;;  %p180_p7 = scmp.eq.s32.totalorder %s1878_s28, 3 }
  0x11   : > { %s2371_s11 = scalar_select %p113_p5, %s2242_s22, %s115_s7  }
  0x12   : > { %s164_s12 = ssub.s32 %s2258_s26, %s3003_s6  ;;  %p185_p8 = scmp.ne.s32.totalorder %s2230_s19, %s2226_s18 }
  0x13   : > { %s166_s13 = sor.u32 %s164_s12, %s112_s8  ;;  %p2377_p10 = por %p180_p7, %p179_p6 }
  0x14   : > { %p167_p9 = scmp.eq.s32.totalorder %s166_s13, 0  ;;  %p186_p11 = scmp.eq.s32.totalorder %s1879_s29, 3 }
  0x15   : > { %p1881_p13 = scmp.ge.s32.totalorder %s2262_s27, 4 }
  0x16   : > { %s2382_s15 = scalar_select %p167_p9, %s2234_s20, %s169_s10  }
  0x17   : > { %p2384_p12 = por %p186_p11, %p185_p8  ;;  %202 = sbr.rel (%p1881_p13) target bundleno = 46 (0x2e), region = 16 }
  0x1c   : > { %227 = sbr.rel (!%p2361_p3) target bundleno = 46 (0x2e), region = 32  ;;  %s229_s17 = sand.u32 (%p2361_p3), 1, %s2242_s22  }
  0x1d   : > { %s1883_s28 = sshll.u32 (%p2361_p3), %s2254_s25, 2  ;;  %s1882_s7 = sshll.u32 (%p2361_p3), %s229_s17, 5 }
  0x1e   : > { %s2988_s3 = sld [smem:[#allocation7_spill]] (%p2361_p3)  ;;  %s231_s10 = scalar_lea.vmem (%p2361_p3), [#allocation3], %s1882_s7 }
  0x24   : > { %s233_s29 = scalar_lea.vmem %s2988_s3, %s1883_s28 }
  0x25   : > { %v250_v0 = vld [vmem:[%s233_s29] sm:$0xf]  ;;  %v252_v1 = vld [vmem:[%s233_s29 + $0x8] sm:$0xf]  ;;  %v254_v2 = vld [vmem:[%s233_s29 + $0x10] sm:$0xf] }
  0x26   : > { %251 = vst [vmem:[%s231_s10] sm:$0xf] %v250_v0  ;;  %v256_v3 = vld [vmem:[%s233_s29 + $0x18] sm:$0xf]  ;;  %v258_v4 = vld [vmem:[%s233_s29 + $0x20] sm:$0xf] }
  0x27   : > { %253 = vst [vmem:[%s231_s10 + $0x4] sm:$0xf] %v252_v1  ;;  %v260_v5 = vld [vmem:[%s233_s29 + $0x28] sm:$0xf]  ;;  %v262_v6 = vld [vmem:[%s233_s29 + $0x30] sm:$0xf] }
  0x28   : > { %255 = vst [vmem:[%s231_s10 + $0x8] sm:$0xf] %v254_v2  ;;  %v264_v7 = vld [vmem:[%s233_s29 + $0x38] sm:$0xf] }
  0x29   : > { %257 = vst [vmem:[%s231_s10 + $0xc] sm:$0xf] %v256_v3 }
  0x2a   : > { %259 = vst [vmem:[%s231_s10 + $0x10] sm:$0xf] %v258_v4 }
  0x2b   : > { %261 = vst [vmem:[%s231_s10 + $0x14] sm:$0xf] %v260_v5 }
  0x2c   : > { %263 = vst [vmem:[%s231_s10 + $0x18] sm:$0xf] %v262_v6 }
  0x2d   : > { %265 = vst [vmem:[%s231_s10 + $0x1c] sm:$0xf] %v264_v7 }
  0x2e PF: > { %p1884_p0 = scmp.ge.s32.totalorder %s2262_s27, 1  ;;  %p310_p1 = scmp.lt.s32.totalorder %s2262_s27, 5 }
  0x30   : > { %p311_p2 = pnand %p1884_p0, %p310_p1 }
  0x31   : > { %s317_s9 = sand.u32 (!%p311_p2), 1, %s2238_s21   ;;  %p365_p3 = scmp.lt.s32.totalorder (!%p311_p2), %s2246_s23, 1 }
  0x32   : > { %314 = sbr.rel (%p311_p2) target bundleno = 549 (0x225), region = 77  ;;  %s1885_s13 = sshll.u32 (!%p311_p2), %s317_s9, 5 }
  0x33   : > { %p360_p4 = scmp.lt.s32.totalorder (!%p311_p2), %s2250_s24, 1  ;;  %s2401_s17 = scalar_lea.vmem (!%p311_p2), [#allocation3], %s1885_s13 }
  0x34   : > { %s2036_s13 = sshll.u32 (!%p311_p2), %s2250_s24, 6 }
  0x37   : > { %vm674_vm0 = vcmask 1043456   ;;  %v799_v8 = vld [vmem:[%s2401_s17] sm:$0xf]  ;;  %v1976_v9 = vld [vmem:[%s2401_s17 + $0x4] sm:$0xf]  ;;  %s2406_s28 = scalar_select %p365_p3, %s2246_s23, 1 }
  0x38   : > { %v801_v10 = vsel %vm674_vm0, %v799_v8, 0  ;;  %v2410_v11 = vsel %vm674_vm0, %v1976_v9, 0  ;;  %s361_s21 = scalar_select %p360_p4, %s2250_s24, 1  ;;  %v1986_v12 = vld [vmem:[%s2401_s17 + $0xc] sm:$0xf]  ;;  %vm441_vm1 = vcmask 64512  }
  0x39   : > { %2057 = vmatpush.bf16.msra.mxu2 %v801_v10  ;;  %2058 = vmatpush.bf16.msra.mxu3 %v2410_v11  ;;  %s1890_s7 = sshll.u32 %s2406_s28, 2  ;;  %v1000_v13 = vsel %vm674_vm0, %v1986_v12, 0  ;;  %v2003_v24 = vld [vmem:[%s2401_s17 + $0x10] sm:$0xf]  ;;  %s375_s9 = scalar_lea.vmem %s2982_s4, %s2406_s28 }
  0x3a   : > { %s372_s29 = scalar_lea.vmem %s2980_s2, %s1890_s7  ;;  %s2040_s10 = sshll.u32 %s361_s21, 7  ;;  %v1238_v26 = vsel %vm674_vm0, %v2003_v24, 0 }
  0x3b   : > { %v520_v14 = vld [vmem:[%s372_s29] sm:$0xf]  ;;  %s2423_s3 = scalar_lea.vmem %s2978_s0, %s2040_s10  ;;  %s1889_s21 = sshll.u32 %s2406_s28, 3 }
  0x3c   : > { %v676_v15 = vsel %vm674_vm0, %v520_v14, 0  ;;  %v2427_v16 = vld [vmem:[%s2423_s3 + $0x18] sm:$0xff]  ;;  %v2430_v17 = vld [vmem:[%s2423_s3 + $0x8] sm:$0xff]  ;;  %v2433_v18 = vld [vmem:[%s2423_s3] sm:$0xff]  ;;  %s368_s12 = scalar_lea.vmem %s2979_s1, %s1889_s21  ;;  %s1746_s21 = sadd.s32 %s2246_s23, %s2036_s13 }
  0x3d   : > { %1009 = vmatpush.bf16.msrb.mxu2 %v1000_v13  ;;  %685 = vmatpush.bf16.msra.mxu1 %v676_v15  ;;  %v377_v19 = vld [vmem:[%s2423_s3] sm:$0xff]   ;;  %v379_v20 = vld [vmem:[%s2423_s3 + $0x8] sm:$0xff]   ;;  %v381_v25 = vld [vmem:[%s2423_s3 + $0x10] sm:$0xff]   ;;  %s2037_s7 = sshll.u32 %s1746_s21, 3 }
  0x3e   : > { %1975 = vmatmul.msk.bf16.vlgmr.msra.gmra.mxu2 %vm441_vm1, %v2427_v16  ;;  %1978 = vmatmul.msk.bf16.vlgmr.msra.gmra.mxu3 %vm441_vm1, %v2430_v17  ;;  %v409_v21 = vunpack.c.l.bf16 %v377_v19  ;;  %v410_v22 = vunpack.c.h.bf16 %v377_v19  ;;  %v411_v23 = vunpack.c.l.bf16 %v379_v20  ;;  %v412_v27 = vunpack.c.h.bf16 %v379_v20  ;;  %v383_v32 = vld [vmem:[%s2423_s3 + $0x18] sm:$0xff]   ;;  %v385_v39 = vld [vmem:[%s2423_s3 + $0x20] sm:$0xff]   ;;  %v2455_v43 = vld [vmem:[%s2423_s3 + $0x10] sm:$0xff]  ;;  %s1748_s29 = scalar_lea.hbm %s2983_s5, %s2037_s7  ;;  %s2172_s7 = scalar_lea.hbm %s2983_s5, 1024 }
  0x3f   : > { %1247 = vmatpush.bf16.msrb.mxu3 %v1238_v26  ;;  %v413_v28 = vunpack.c.l.bf16 %v381_v25  ;;  %v414_v34 = vunpack.c.h.bf16 %v381_v25  ;;  %v415_v37 = vunpack.c.l.bf16 %v383_v32  ;;  %v416_v41 = vunpack.c.h.bf16 %v383_v32  ;;  %v387_v47 = vld [vmem:[%s2423_s3 + $0x28] sm:$0xff]   ;;  %v389_v54 = vld [vmem:[%s2423_s3 + $0x30] sm:$0xff]   ;;  %v391_v61 = vld [vmem:[%s2423_s3 + $0x38] sm:$0xff]  }
  0x40   : > { %1956 = vmatmul.msk.bf16.vlgmr.msra.gmra.mxu1 %vm441_vm1, %v2433_v18  ;;  %v442_v29 = vsel %vm441_vm1, %v409_v21, 0.0  ;;  %v443_v30 = vsel %vm441_vm1, %v410_v22, 0.0  ;;  %v445_v31 = vsel %vm441_vm1, %v411_v23, 0.0  ;;  %v447_v35 = vsel %vm441_vm1, %v412_v27, 0.0  ;;  %v393_v4 = vld [vmem:[%s2423_s3 + $0x40] sm:$0xff]   ;;  %v395_v12 = vld [vmem:[%s2423_s3 + $0x48] sm:$0xff]  }
  0x41   : > { %810 = vmatpush.bf16.msrb.mxu1 %v801_v10  ;;  %v444_v33 = vadd.f32 %v443_v30, %v442_v29  ;;  %v449_v38 = vsel %vm441_vm1, %v413_v28, 0.0  ;;  %v451_v42 = vsel %vm441_vm1, %v414_v34, 0.0  ;;  %v417_v45 = vunpack.c.l.bf16 %v385_v39  ;;  %v519_v22 = vld [vmem:[%s368_s12] sm:$0xff]  ;;  %v397_v23 = vld [vmem:[%s2423_s3 + $0x50] sm:$0xff]   ;;  %v399_v30 = vld [vmem:[%s2423_s3 + $0x58] sm:$0xff]  }
  0x42   : > { %v453_v46 = vsel %vm441_vm1, %v415_v37, 0.0  ;;  %v418_v49 = vunpack.c.h.bf16 %v385_v39  ;;  %v455_v50 = vsel %vm441_vm1, %v416_v41, 0.0  ;;  %v419_v52 = vunpack.c.l.bf16 %v387_v47  ;;  %540 = vmatpush.msra.mxu0 %v519_v22  ;;  %v401_v37 = vld [vmem:[%s2423_s3 + $0x60] sm:$0xff]  }
  0x43   : > { %v446_v36 = vadd.f32 %v445_v31, %v444_v33  ;;  %v457_v53 = vsel %vm441_vm1, %v417_v45, 0.0  ;;  %v420_v56 = vunpack.c.h.bf16 %v387_v47  ;;  %v421_v59 = vunpack.c.l.bf16 %v389_v54 }
  0x44   : > { %v459_v57 = vsel %vm441_vm1, %v418_v49, 0.0  ;;  %v461_v60 = vsel %vm441_vm1, %v419_v52, 0.0  ;;  %v422_v63 = vunpack.c.h.bf16 %v389_v54  ;;  %v423_v2 = vunpack.c.l.bf16 %v391_v61  ;;  %881 = vmatpush.bf16.msrb.mxu0 %v2410_v11 }
  0x45   : > { %v448_v40 = vadd.f32 %v447_v35, %v446_v36  ;;  %v463_v0 = vsel %vm441_vm1, %v420_v56, 0.0  ;;  %v465_v3 = vsel %vm441_vm1, %v421_v59, 0.0  ;;  %v424_v6 = vunpack.c.h.bf16 %v391_v61  ;;  %v407_v59 = vld [vmem:[%s2423_s3 + $0x78] sm:$0xff]  }
  0x46   : > { %v467_v7 = vsel %vm441_vm1, %v422_v63, 0.0  ;;  %v425_v9 = vunpack.c.l.bf16 %v393_v4  ;;  %v469_v10 = vsel %vm441_vm1, %v423_v2, 0.0  ;;  %v426_v14 = vunpack.c.h.bf16 %v393_v4 }
  0x47   : > { %v450_v44 = vadd.f32 %v449_v38, %v448_v40  ;;  %v471_v15 = vsel %vm441_vm1, %v424_v6, 0.0  ;;  %v427_v20 = vunpack.c.l.bf16 %v395_v12  ;;  %v428_v25 = vunpack.c.h.bf16 %v395_v12 }
  0x48   : > { %v473_v21 = vsel %vm441_vm1, %v425_v9, 0.0  ;;  %v475_v26 = vsel %vm441_vm1, %v426_v14, 0.0  ;;  %v429_v28 = vunpack.c.l.bf16 %v397_v23  ;;  %v430_v32 = vunpack.c.h.bf16 %v397_v23  ;;  %v2045_v9 = vld [vmem:[%s2423_s3 + $0x20] sm:$0xff] }
  0x49   : > { %v452_v48 = vadd.f32 %v451_v42, %v450_v44  ;;  %v477_v29 = vsel %vm441_vm1, %v427_v20, 0.0  ;;  %v479_v33 = vsel %vm441_vm1, %v428_v25, 0.0  ;;  %v431_v35 = vunpack.c.l.bf16 %v399_v30  ;;  %v403_v44 = vld [vmem:[%s2423_s3 + $0x68] sm:$0xff]  }
  0x4a   : > { %v481_v36 = vsel %vm441_vm1, %v429_v28, 0.0  ;;  %v432_v39 = vunpack.c.h.bf16 %v399_v30  ;;  %v483_v40 = vsel %vm441_vm1, %v430_v32, 0.0  ;;  %v433_v41 = vunpack.c.l.bf16 %v401_v37  ;;  %v2020_v32 = vld [vmem:[%s2401_s17 + $0x14] sm:$0xf] }
  0x4b   : > { %v454_v51 = vadd.f32 %v453_v46, %v452_v48  ;;  %v485_v42 = vsel %vm441_vm1, %v431_v35, 0.0  ;;  %v434_v46 = vunpack.c.h.bf16 %v401_v37  ;;  %v435_v49 = vunpack.c.l.bf16 %v403_v44  ;;  %v2048_v35 = vld [vmem:[%s2423_s3 + $0x38] sm:$0xff] }
  0x4c   : > { %v487_v47 = vsel %vm441_vm1, %v432_v39, 0.0  ;;  %v2264_v56 = vmov 256.0   ;;  %v440_v4 = vunpack.c.h.bf16 %v407_v59 }
  0x4d   : > { %v456_v55 = vadd.f32 %v455_v50, %v454_v51  ;;  %v489_v50 = vsel %vm441_vm1, %v433_v41, 0.0  ;;  %v405_v51 = vld [vmem:[%s2423_s3 + $0x70] sm:$0xff]   ;;  %v491_v54 = vsel %vm441_vm1, %v434_v46, 0.0  ;;  %2150 = vrcp.f32 %v2264_v56  ;;  %v2589_v56 = vld [vmem:[%s2423_s3 + $0x60] sm:$0xff] }
  0x4e   : > { %1979 = vmatmul.msk.bf16.gmra.mxu3 %vm441_vm1, %v2455_v43  ;;  %1987 = vmatmul.msk.bf16.vlgmr.msrb.gmra.mxu2 %vm441_vm1, %v2433_v18  ;;  %v438_v61 = vunpack.c.h.bf16 %v405_v51  ;;  %v503_v12 = vsel %vm441_vm1, %v440_v4, 0.0 }
  0x4f   : > { %v458_v58 = vadd.f32 %v457_v53, %v456_v55  ;;  %v436_v53 = vunpack.c.h.bf16 %v403_v44 }
  0x50   : > { %1957 = vmatmul.msk.bf16.gmra.mxu1 %vm441_vm1, %v2430_v17 }
  0x51   : > { %v460_v62 = vadd.f32 %v459_v57, %v458_v58  ;;  %v437_v57 = vunpack.c.l.bf16 %v405_v51  ;;  %v493_v58 = vsel %vm441_vm1, %v435_v49, 0.0 }
  0x53   : > { %v462_v1 = vadd.f32 %v461_v60, %v460_v62  ;;  %v495_v62 = vsel %vm441_vm1, %v436_v53, 0.0  ;;  %v2151_v2 = vpop.eup %2150 }
  0x54   : > { %vm516_vm2 = vweird.f32 %v2151_v2 }
  0x55   : > { %v464_v5 = vadd.f32 %v463_v0, %v462_v1  ;;  %v439_v0 = vunpack.c.l.bf16 %v407_v59  ;;  %v497_v1 = vsel %vm441_vm1, %v437_v57, 0.0  ;;  %v2596_v59 = vld [vmem:[%s2423_s3 + $0x58] sm:$0xff] }
  0x57   : > { %v466_v8 = vadd.f32 %v465_v3, %v464_v5  ;;  %v499_v5 = vsel %vm441_vm1, %v438_v61, 0.0 }
  0x59   : > { %v468_v13 = vadd.f32 %v467_v7, %v466_v8  ;;  %v501_v7 = vsel %vm441_vm1, %v439_v0, 0.0  ;;  %v512_v8 = vmul.f32 256.0, %v2151_v2 }
  0x5b   : > { %v470_v19 = vadd.f32 %v469_v10, %v468_v13  ;;  %v513_v14 = vsub.f32 1.0, %v512_v8  ;;  %v2030_v8 = vld [vmem:[%s2401_s17 + $0x1c] sm:$0xf] }
  0x5d   : > { %v472_v24 = vadd.f32 %v471_v15, %v470_v19  ;;  %v514_v20 = vmul.f32 %v2151_v2, %v513_v14 }
  0x5e   : > { %1980 = vmatmul.msk.bf16.gmra.mxu3 %vm441_vm1, %v2427_v16  ;;  %1988 = vmatmul.msk.bf16.gmra.mxu2 %vm441_vm1, %v2430_v17 }
  0x5f   : > { %v474_v27 = vadd.f32 %v473_v21, %v472_v24  ;;  %v515_v23 = vadd.f32 %v2151_v2, %v514_v20 }
  0x60   : > { %1958 = vmatmul.msk.bf16.gmra.mxu1 %vm441_vm1, %v2455_v43 }
  0x61   : > { %v476_v31 = vadd.f32 %v475_v26, %v474_v27  ;;  %v517_v26 = vsel %vm516_vm2, %v2151_v2, %v515_v23  ;;  %v1981_v27 = vld [vmem:[%s2401_s17 + $0x8] sm:$0xf] }
  0x63   : > { %v478_v34 = vadd.f32 %v477_v29, %v476_v31  ;;  %v2046_v29 = vld [vmem:[%s2423_s3 + $0x28] sm:$0xff]  ;;  %v930_v31 = vsel %vm674_vm0, %v1981_v27, 0 }
  0x65   : > { %v480_v38 = vadd.f32 %v479_v33, %v478_v34  ;;  %v1476_v33 = vsel %vm674_vm0, %v2020_v32, 0  ;;  %v2047_v34 = vld [vmem:[%s2423_s3 + $0x30] sm:$0xff] }
  0x67   : > { %v482_v11 = vadd.f32 %v481_v36, %v480_v38  ;;  %v2049_v36 = vld [vmem:[%s2423_s3 + $0x40] sm:$0xff] }
  0x69   : > { %v484_v45 = vadd.f32 %v483_v40, %v482_v11  ;;  %v2025_v11 = vld [vmem:[%s2401_s17 + $0x18] sm:$0xf]  ;;  %s357_s17 = sand.u32 1, %s2230_s19  }
  0x6a   : > { %v1546_v44 = vsel %vm674_vm0, %v2025_v11, 0  ;;  %s1886_s28 = sshll.u32 %s357_s17, 8  ;;  %s1736_s23 = scalar_lea.sflag [#allocation5], %s357_s17 }
  0x6b   : > { %v486_v48 = vadd.f32 %v485_v42, %v484_v45  ;;  %v2050_v45 = vld [vmem:[%s2423_s3 + $0x48] sm:$0xff] }
  0x6d   : > { %v488_v52 = vadd.f32 %v487_v47, %v486_v48 }
  0x6e   : > { %1989 = vmatmul.msk.bf16.gmra.mxu2 %vm441_vm1, %v2455_v43  ;;  %2004 = vmatmul.msk.bf16.vlgmr.msrb.gmra.mxu3 %vm441_vm1, %v2433_v18 }
  0x6f   : > { %v490_v55 = vadd.f32 %v489_v50, %v488_v52  ;;  %v2051_v52 = vld [vmem:[%s2423_s3 + $0x50] sm:$0xff] }
  0x70   : > { %1959 = vmatmul.msk.bf16.gmra.mxu1 %vm441_vm1, %v2427_v16 }
  0x71   : > { %v492_v60 = vadd.f32 %v491_v54, %v490_v55 }
  0x73   : > { %v494_v63 = vadd.f32 %v493_v58, %v492_v60 }
  0x75   : > { %v496_v3 = vadd.f32 %v495_v62, %v494_v63  ;;  %v2605_v63 = vld [vmem:[%s2423_s3 + $0x68] sm:$0xff] }
  0x77   : > { %v498_v6 = vadd.f32 %v497_v1, %v496_v3 }
  0x79   : > { %v500_v10 = vadd.f32 %v499_v5, %v498_v6  ;;  %v2619_v6 = vld [vmem:[%s2423_s3 + $0x70] sm:$0xff] }
  0x7b   : > { %v502_v13 = vadd.f32 %v501_v7, %v500_v10 }
  0x7d   : > { %v504_v15 = vadd.f32 %v503_v12, %v502_v13  ;;  %v1604_v12 = vsel %vm674_vm0, %v2030_v8, 0  ;;  %v521_v13 = vld [vmem:[%s375_s9] sm:$0x1]  ;;  %s1751_s9 = sshll.u32 %s1748_s29, 4  ;;  %s1752_s9 = int_to_ptr.hbm [resolvable:$true] %s1751_s9 }
  0x7e   : > { %1990 = vmatmul.msk.bf16.gmra.mxu2 %vm441_vm1, %v2427_v16  ;;  %2005 = vmatmul.msk.bf16.gmra.mxu3 %vm441_vm1, %v2430_v17  ;;  %s2166_s24 = sshra.s32 %s1752_s9, 4  ;;  %s2167_s24 = int_to_ptr.hbm [resolvable:$true] %s2166_s24 }
  0x7f   : > { %v505_v19 = vrot.slane %v504_v15, 4  ;;  %p2173_p8 = scmp.lt.s32.totalorder %s2167_s24, %s2983_s5 }
  0x80   : > { %1960 = vmatmul.msk.bf16.gmra.mxu1 %vm441_vm1, %v2045_v9 }
  0x81   : > { %v506_v21 = vadd.f32 %v505_v19, %v504_v15 }
  0x83   : > { %v507_v22 = vrot.slane %v506_v21, 2 }
  0x85   : > { %v508_v24 = vadd.f32 %v507_v22, %v506_v21 }
  0x87   : > { %v509_v25 = vrot.slane %v508_v24, 1 }
  0x89   : > { %v510_v28 = vadd.f32 %v509_v25, %v508_v24 }
  0x8b   : > { %v518_v30 = vmul.f32 %v517_v26, %v510_v28 }
  0x8d   : > { %1891 = vmatmul.msk.f32.vlgmr.msra.gmra.mxu0 %vm441_vm1, %v518_v30 }
  0x8e   : > { %1991 = vmatmul.msk.bf16.gmra.mxu2 %vm441_vm1, %v2045_v9  ;;  %2006 = vmatmul.msk.bf16.gmra.mxu3 %vm441_vm1, %v2455_v43 }
  0x8f   : > { %939 = vmatpush.bf16.msra.mxu0 %v930_v31 }
  0x90   : > { %1961 = vmatmul.msk.bf16.gmra.mxu1 %vm441_vm1, %v2046_v29 }
  0x95   : > { %1977 = vmatmul.msk.bf16.vlgmr.msrb.gmra.mxu0 %vm441_vm1, %v2433_v18 }
  0x96   : > { %1485 = vmatpush.bf16.msrb.mxu0 %v1476_v33 }
  0x9e   : > { %1992 = vmatmul.msk.bf16.gmra.mxu2 %vm441_vm1, %v2046_v29  ;;  %2007 = vmatmul.msk.bf16.gmra.mxu3 %vm441_vm1, %v2427_v16 }
  0xa0   : > { %1962 = vmatmul.msk.bf16.gmra.mxu1 %vm441_vm1, %v2047_v34 }
  0xa5   : > { %1982 = vmatmul.msk.bf16.vlgmr.msra.gmra.mxu0 %vm441_vm1, %v2433_v18 }
  0xa6   : > { %1555 = vmatpush.bf16.msra.mxu0 %v1546_v44 }
  0xae   : > { %1993 = vmatmul.msk.bf16.gmra.mxu2 %vm441_vm1, %v2047_v34  ;;  %2008 = vmatmul.msk.bf16.gmra.mxu3 %vm441_vm1, %v2045_v9 }
  0xb0   : > { %1963 = vmatmul.msk.bf16.gmra.mxu1 %vm441_vm1, %v2048_v35 }
  0xb5   : > { %1983 = vmatmul.msk.bf16.gmra.mxu0 %vm441_vm1, %v2430_v17 }
  0xbd   : > { %v2549_v37 = vpop.f32.mrf.mxu1 }
  0xbe   : > { %1994 = vmatmul.msk.bf16.gmra.mxu2 %vm441_vm1, %v2048_v35  ;;  %2009 = vmatmul.msk.bf16.gmra.mxu3 %vm441_vm1, %v2046_v29 }
  0xc0   : > { %1964 = vmatmul.msk.bf16.gmra.mxu1 %vm441_vm1, %v2049_v36 }
  0xc1   : > { %v2554_v38 = vpop.f32.mrf.mxu2  ;;  %v2556_v39 = vpop.f32.mrf.mxu3 }
  0xc5   : > { %v2558_v40 = vpop.f32.mrf.mxu1  ;;  %1984 = vmatmul.msk.bf16.gmra.mxu0 %vm441_vm1, %v2455_v43 }
  0xc9   : > { %v826_v41 = vpop.f32.mrf.mxu2  ;;  %v2563_v42 = vpop.f32.mrf.mxu3 }
  0xcd   : > { %v2567_v46 = vpop.f32.mrf.mxu1 }
  0xce   : > { %1995 = vmatmul.msk.bf16.gmra.mxu2 %vm441_vm1, %v2049_v36  ;;  %2010 = vmatmul.msk.bf16.gmra.mxu3 %vm441_vm1, %v2047_v34 }
  0xd0   : > { %1965 = vmatmul.msk.bf16.gmra.mxu1 %vm441_vm1, %v2050_v45 }
  0xd1   : > { %v2572_v47 = vpop.f32.mrf.mxu3  ;;  %v2574_v48 = vpop.f32.mrf.mxu2 }
  0xd5   : > { %v694_v49 = vpop.f32.mrf.mxu1  ;;  %1985 = vmatmul.msk.bf16.gmra.mxu0 %vm441_vm1, %v2427_v16 }
  0xd9   : > { %v2578_v50 = vpop.f32.mrf.mxu3  ;;  %v1013_v51 = vpop.f32.mrf.mxu2 }
  0xdd   : > { %v2581_v53 = vpop.f32.mrf.mxu1 }
  0xde   : > { %1996 = vmatmul.msk.bf16.gmra.mxu2 %vm441_vm1, %v2050_v45  ;;  %2011 = vmatmul.msk.bf16.gmra.mxu3 %vm441_vm1, %v2048_v35 }
  0xe0   : > { %1966 = vmatmul.msk.bf16.gmra.mxu1 %vm441_vm1, %v2051_v52 }
  0xe1   : > { %v2586_v54 = vpop.f32.mrf.mxu3  ;;  %v1015_v55 = vpop.f32.mrf.mxu2 }
  0xe2   : > { %v1092_v14 = vrot.slane %v1015_v55, 4 }
  0xe4   : > { %v1124_v25 = vsel %vm674_vm0, 0.0, %v1092_v14 }
  0xe5   : > { %v699_v57 = vpop.f32.mrf.mxu1  ;;  %2021 = vmatmul.msk.bf16.vlgmr.msrb.gmra.mxu0 %vm441_vm1, %v2589_v56 }
  0xe6   : > { %1613 = vmatpush.bf16.msrb.mxu0 %v1604_v12 }
  0xe9   : > { %v2593_v16 = vpop.f32.mrf.mxu3  ;;  %v1017_v58 = vpop.f32.mrf.mxu2 }
  0xed   : > { %v2598_v60 = vpop.f32.mrf.mxu1 }
  0xee   : > { %1997 = vmatmul.msk.bf16.gmra.mxu2 %vm441_vm1, %v2051_v52  ;;  %2012 = vmatmul.msk.bf16.gmra.mxu3 %vm441_vm1, %v2049_v36  ;;  %v2653_v36 = vld [vmem:[%s2423_s3 + $0x78] sm:$0xff]  ;;  %s2667_s3 = scalar_lea.vmem [#allocation4], %s1886_s28  ;;  %s2168_s28 = scalar_lea.hbm %s2167_s24, 256 }
  0xef   : > { %s1749_s10 = sshll.u32 %s2667_s3, 4  ;;  %p2169_p5 = scmp.ne.s32.totalorder %s2167_s24, %s2168_s28  ;;  %s1750_s10 = int_to_ptr.vmem [resolvable:$true] %s1749_s10 }
  0xf0   : > { %1967 = vmatmul.msk.bf16.gmra.mxu1 %vm441_vm1, %v2596_v59  ;;  %p2174_p9 = scmp.lt.s32.totalorder %s2172_s7, %s2168_s28 }
  0xf1   : > { %v1019_v61 = vpop.f32.mrf.mxu2  ;;  %v1249_v62 = vpop.f32.mrf.mxu3  ;;  %p2170_p6 = pnand %p2169_p5, %p2377_p10 }
  0xf2   : > { %v1093_v20 = vrot.slane %v1019_v61, 4  ;;  %p2175_p11 = por %p2174_p9, %p2173_p8 }
  0xf3   : > { %p2171_p7 = pneg %p2170_p6 }
  0xf4   : > { %v1125_v28 = vsel %vm674_vm0, 0.0, %v1093_v20 }
  0xf5   : > { %v704_v0 = vpop.f32.mrf.mxu1  ;;  %2022 = vmatmul.msk.bf16.gmra.mxu0 %vm441_vm1, %v2605_v63  ;;  %p2176_p13 = pnand %p2175_p11, %p2171_p7 }
  0xf9   : > { %v1021_v1 = vpop.f32.mrf.mxu2  ;;  %v2609_v2 = vpop.f32.mrf.mxu3 }
  0xfd   : > { %v2611_v3 = vpop.f32.mrf.mxu1 }
  0xfe   : > { %1998 = vmatmul.msk.bf16.gmra.mxu2 %vm441_vm1, %v2596_v59  ;;  %2013 = vmatmul.msk.bf16.gmra.mxu3 %vm441_vm1, %v2050_v45 }
 0x100   : > { %1968 = vmatmul.msk.bf16.gmra.mxu1 %vm441_vm1, %v2589_v56 }
 0x101   : > { %v1023_v4 = vpop.f32.mrf.mxu2  ;;  %v1253_v5 = vpop.f32.mrf.mxu3 }
 0x102   : > { %v1094_v21 = vrot.slane %v1023_v4, 4 }
 0x104   : > { %v1126_v29 = vsel %vm674_vm0, 0.0, %v1094_v21 }
 0x105   : > { %v709_v7 = vpop.f32.mrf.mxu1  ;;  %2023 = vmatmul.msk.bf16.gmra.mxu0 %vm441_vm1, %v2619_v6 }
 0x109   : > { %v1025_v9 = vpop.f32.mrf.mxu2  ;;  %v1254_v10 = vpop.f32.mrf.mxu3 }
 0x10a   : > { %v542_v15 = vpop.f32.mrf.mxu0  ;;  %v1330_v23 = vrot.slane %v1254_v10, 4 }
 0x10b   : > { %v543_v22 = vadd.f32 %v542_v15, %v521_v13 }
 0x10c   : > { %v1362_v34 = vsel %vm674_vm0, %v1330_v23, 0.0 }
 0x10d   : > { %v2629_v19 = vpop.f32.mrf.mxu1  ;;  %v2634_v24 = vperm.slane %v543_v22, 0 }
 0x10e   : > { %1999 = vmatmul.msk.bf16.gmra.mxu2 %vm441_vm1, %v2589_v56  ;;  %2014 = vmatmul.msk.bf16.gmra.mxu3 %vm441_vm1, %v2051_v52 }
 0x10f   : > { %v693_v30 = vadd.f32 %v2567_v46, %v2634_v24  ;;  %v695_v31 = vadd.f32 %v694_v49, %v2634_v24  ;;  %v700_v32 = vadd.f32 %v699_v57, %v2634_v24  ;;  %v705_v33 = vadd.f32 %v704_v0, %v2634_v24 }
 0x110   : > { %1969 = vmatmul.msk.bf16.gmra.mxu1 %vm441_vm1, %v2605_v63  ;;  %v710_v49 = vadd.f32 %v709_v7, %v2634_v24  ;;  %v698_v62 = vadd.f32 %v2581_v53, %v2634_v24  ;;  %v703_v21 = vadd.f32 %v2598_v60, %v2634_v24 }
 0x111   : > { %v1027_v26 = vpop.f32.mrf.mxu2  ;;  %v1257_v27 = vpop.f32.mrf.mxu3  ;;  %v2648_v35 = vadd.f32 %v1124_v25, %v695_v31  ;;  %v2655_v11 = vadd.f32 %v1125_v28, %v700_v32  ;;  %v2657_v41 = vadd.f32 %v1126_v29, %v705_v33  ;;  %v2662_v51 = vadd.f32 %v1362_v34, %v693_v30 }
 0x112   : > { %v2659_v44 = vpop.f32.mrf.mxu0  ;;  %v1095_v45 = vrot.slane %v1027_v26, 4 }
 0x114   : > { %v1127_v52 = vsel %vm674_vm0, 0.0, %v1095_v45 }
 0x115   : > { %v714_v46 = vpop.f32.mrf.mxu1  ;;  %v1180_v55 = vadd.f32 %v1127_v52, %v710_v49  ;;  %2024 = vmatmul.msk.bf16.gmra.mxu0 %vm441_vm1, %v2653_v36  ;;  %v708_v49 = vadd.f32 %v2611_v3, %v2634_v24 }
 0x116   : > { %v715_v9 = vadd.f32 %v714_v46, %v2634_v24 }
 0x117   : > { %1712 = vst [vmem:[%s2667_s3 + $0x48] sm:$0xff] %v1180_v55 }
 0x119   : > { %v1029_v57 = vpop.f32.mrf.mxu2  ;;  %v1258_v58 = vpop.f32.mrf.mxu3 }
 0x11a   : > { %v1331_v61 = vrot.slane %v1258_v58, 4  ;;  %v2673_v1 = vpop.f32.mrf.mxu0 }
 0x11c   : > { %v1363_v0 = vsel %vm674_vm0, %v1331_v61, 0.0 }
 0x11d   : > { %v2675_v4 = vpop.f32.mrf.mxu1  ;;  %v2677_v5 = vadd.f32 %v1363_v0, %v698_v62 }
 0x11e   : > { %2000 = vmatmul.msk.bf16.gmra.mxu2 %vm441_vm1, %v2605_v63  ;;  %2015 = vmatmul.msk.bf16.gmra.mxu3 %vm441_vm1, %v2596_v59 }
 0x120   : > { %1970 = vmatmul.msk.bf16.gmra.mxu1 %vm441_vm1, %v2619_v6 }
 0x121   : > { %v1031_v7 = vpop.f32.mrf.mxu2  ;;  %v1261_v53 = vpop.f32.mrf.mxu3 }
 0x122   : > { %v1096_v8 = vrot.slane %v1031_v7, 4  ;;  %v941_v12 = vpop.f32.mrf.mxu0 }
 0x124   : > { %v1128_v10 = vsel %vm674_vm0, 0.0, %v1096_v8 }
 0x125   : > { %v1182_v13 = vadd.f32 %v1128_v10, %v715_v9  ;;  %v719_v14 = vpop.f32.mrf.mxu1  ;;  %2026 = vmatmul.msk.bf16.vlgmr.msra.gmra.mxu0 %vm441_vm1, %v2589_v56 }
 0x126   : > { %v720_v29 = vadd.f32 %v719_v14, %v2634_v24 }
 0x127   : > { %1714 = vst [vmem:[%s2667_s3 + $0x58] sm:$0xff] %v1182_v13 }
 0x129   : > { %v1033_v15 = vpop.f32.mrf.mxu2  ;;  %v1262_v20 = vpop.f32.mrf.mxu3 }
 0x12a   : > { %v1332_v59 = vrot.slane %v1262_v20, 4  ;;  %v2693_v23 = vpop.f32.mrf.mxu0 }
 0x12c   : > { %v1364_v22 = vsel %vm674_vm0, %v1332_v59, 0.0 }
 0x12d   : > { %v2695_v25 = vpop.f32.mrf.mxu1  ;;  %v2697_v26 = vadd.f32 %v1364_v22, %v703_v21 }
 0x12e   : > { %2001 = vmatmul.msk.bf16.gmra.mxu2 %vm441_vm1, %v2619_v6  ;;  %2016 = vmatmul.msk.bf16.gmra.mxu3 %vm441_vm1, %v2589_v56 }
 0x130   : > { %1971 = vmatmul.msk.bf16.gmra.mxu1 %vm441_vm1, %v2653_v36 }
 0x131   : > { %v1035_v27 = vpop.f32.mrf.mxu2  ;;  %v1265_v60 = vpop.f32.mrf.mxu3 }
 0x132   : > { %v1097_v28 = vrot.slane %v1035_v27, 4  ;;  %v945_v31 = vpop.f32.mrf.mxu0 }
 0x134   : > { %v1129_v30 = vsel %vm674_vm0, 0.0, %v1097_v28 }
 0x135   : > { %v1184_v32 = vadd.f32 %v1129_v30, %v720_v29  ;;  %v724_v33 = vpop.f32.mrf.mxu1  ;;  %2027 = vmatmul.msk.bf16.gmra.mxu0 %vm441_vm1, %v2605_v63 }
 0x136   : > { %v725_v0 = vadd.f32 %v724_v33, %v2634_v24 }
 0x137   : > { %1716 = vst [vmem:[%s2667_s3 + $0x68] sm:$0xff] %v1184_v32 }
 0x139   : > { %v1037_v34 = vpop.f32.mrf.mxu2  ;;  %v1266_v45 = vpop.f32.mrf.mxu3 }
 0x13a   : > { %v1333_v46 = vrot.slane %v1266_v45, 4  ;;  %v2713_v55 = vpop.f32.mrf.mxu0 }
 0x13c   : > { %v1365_v52 = vsel %vm674_vm0, %v1333_v46, 0.0 }
 0x13d   : > { %v1417_v57 = vadd.f32 %v1365_v52, %v708_v49  ;;  %v2715_v58 = vpop.f32.mrf.mxu1  ;;  %v1091_v52 = vrot.slane %v2574_v48, 4 }
 0x13e   : > { %2002 = vmatmul.msk.bf16.gmra.mxu2 %vm441_vm1, %v2653_v36  ;;  %2017 = vmatmul.msk.bf16.gmra.mxu3 %vm441_vm1, %v2605_v63 }
 0x13f   : > { %1711 = vst [vmem:[%s2667_s3 + $0x40] sm:$0xff] %v1417_v57 }
 0x140   : > { %1972 = vmatmul.msk.bf16.vlgmr.msrb.gmra.mxu1 %vm441_vm1, %v2433_v18  ;;  %v713_v18 = vadd.f32 %v2629_v19, %v2634_v24 }
 0x141   : > { %v1039_v61 = vpop.f32.mrf.mxu2  ;;  %v1269_v3 = vpop.f32.mrf.mxu3 }
 0x142   : > { %v1098_v62 = vrot.slane %v1039_v61, 4  ;;  %v949_v53 = vpop.f32.mrf.mxu0  ;;  %v690_v3 = vadd.f32 %v2558_v40, %v2634_v24 }
 0x144   : > { %v1130_v7 = vsel %vm674_vm0, 0.0, %v1098_v62 }
 0x145   : > { %v1186_v8 = vadd.f32 %v1130_v7, %v725_v0  ;;  %v729_v9 = vpop.f32.mrf.mxu1  ;;  %2028 = vmatmul.msk.bf16.gmra.mxu0 %vm441_vm1, %v2619_v6  ;;  %v1123_v0 = vsel %vm674_vm0, 0.0, %v1091_v52 }
 0x146   : > { %v730_v19 = vadd.f32 %v729_v9, %v2634_v24 }
 0x147   : > { %1718 = vst [vmem:[%s2667_s3 + $0x78] sm:$0xff] %v1186_v8 }
 0x149   : > { %v1041_v10 = vpop.f32.mrf.mxu2  ;;  %v1270_v12 = vpop.f32.mrf.mxu3 }
 0x14a   : > { %v1334_v13 = vrot.slane %v1270_v12, 4  ;;  %v2732_v15 = vpop.f32.mrf.mxu0  ;;  %v1172_v10 = vadd.f32 %v1123_v0, %v690_v3 }
 0x14c   : > { %v1366_v14 = vsel %vm674_vm0, %v1334_v13, 0.0 }
 0x14d   : > { %v1419_v20 = vadd.f32 %v1366_v14, %v713_v18  ;;  %v2734_v59 = vpop.f32.mrf.mxu1  ;;  %v723_v14 = vadd.f32 %v2695_v25, %v2634_v24 }
 0x14e   : > { %2018 = vmatmul.msk.bf16.gmra.mxu3 %vm441_vm1, %v2619_v6 }
 0x14f   : > { %1713 = vst [vmem:[%s2667_s3 + $0x50] sm:$0xff] %v1419_v20 }
 0x150   : > { %1973 = vmatmul.msk.bf16.gmra.mxu1 %vm441_vm1, %v2430_v17  ;;  %v718_v17 = vadd.f32 %v2675_v4, %v2634_v24 }
 0x151   : > { %v1043_v21 = vpop.f32.mrf.mxu2  ;;  %v1273_v22 = vpop.f32.mrf.mxu3 }
 0x152   : > { %v1099_v27 = vrot.slane %v1043_v21, 4  ;;  %v953_v28 = vpop.f32.mrf.mxu0 }
 0x154   : > { %v1131_v60 = vsel %vm674_vm0, 0.0, %v1099_v27 }
 0x155   : > { %v1188_v29 = vadd.f32 %v1131_v60, %v730_v19  ;;  %v734_v30 = vpop.f32.mrf.mxu1  ;;  %2029 = vmatmul.msk.bf16.gmra.mxu0 %vm441_vm1, %v2653_v36 }
 0x156   : > { %v735_v62 = vadd.f32 %v734_v30, %v2634_v24 }
 0x157   : > { %1720 = vst [vmem:[%s2667_s3 + $0x88] sm:$0xff] %v1188_v29 }
 0x159   : > { %v1045_v31 = vpop.f32.mrf.mxu2  ;;  %v1274_v32 = vpop.f32.mrf.mxu3 }
 0x15a   : > { %v1335_v33 = vrot.slane %v1274_v32, 4  ;;  %v2749_v45 = vpop.f32.mrf.mxu0 }
 0x15c   : > { %v1367_v34 = vsel %vm674_vm0, %v1335_v33, 0.0 }
 0x15d   : > { %v1421_v46 = vadd.f32 %v1367_v34, %v718_v17  ;;  %v2751_v49 = vpop.f32.mrf.mxu1 }
 0x15e   : > { %2019 = vmatmul.msk.bf16.gmra.mxu3 %vm441_vm1, %v2653_v36 }
 0x15f   : > { %1715 = vst [vmem:[%s2667_s3 + $0x60] sm:$0xff] %v1421_v46 }
 0x160   : > { %1974 = vmatmul.msk.bf16.gmra.mxu1 %vm441_vm1, %v2455_v43 }
 0x161   : > { %v1047_v57 = vpop.f32.mrf.mxu2  ;;  %v1277_v61 = vpop.f32.mrf.mxu3 }
 0x162   : > { %v1100_v4 = vrot.slane %v1047_v57, 4  ;;  %v1487_v53 = vpop.f32.mrf.mxu0  ;;  %v728_v57 = vadd.f32 %v2715_v58, %v2634_v24 }
 0x163   : > { %v1507_v48 = vrot.slane %v1487_v53, 4 }
 0x164   : > { %v1132_v7 = vsel %vm674_vm0, 0.0, %v1100_v4 }
 0x165   : > { %v1190_v8 = vadd.f32 %v1132_v7, %v735_v62  ;;  %v739_v9 = vpop.f32.mrf.mxu1  ;;  %v1515_v43 = vsel %vm674_vm0, 0.0, %v1507_v48  ;;  %2031 = vmatmul.msk.bf16.vlgmr.msrb.gmra.mxu0 %vm441_vm1, %v2589_v56 }
 0x166   : > { %v2768_v13 = vadd.f32 %v1515_v43, %v1172_v10  ;;  %v740_v56 = vadd.f32 %v739_v9, %v2634_v24 }
 0x167   : > { %1722 = vst [vmem:[%s2667_s3 + $0x98] sm:$0xff] %v1190_v8 }
 0x169   : > { %v1049_v12 = vpop.f32.mrf.mxu2  ;;  %v1278_v40 = vpop.f32.mrf.mxu3 }
 0x16a   : > { %v1336_v18 = vrot.slane %v1278_v40, 4  ;;  %v1489_v21 = vpop.f32.mrf.mxu0 }
 0x16c   : > { %v1368_v20 = vsel %vm674_vm0, %v1336_v18, 0.0 }
 0x16d   : > { %v1423_v22 = vadd.f32 %v1368_v20, %v723_v14  ;;  %v2773_v27 = vpop.f32.mrf.mxu1  ;;  %v733_v14 = vadd.f32 %v2734_v59, %v2634_v24 }
 0x16f   : > { %1717 = vst [vmem:[%s2667_s3 + $0x70] sm:$0xff] %v1423_v22 }
 0x171   : > { %v1051_v19 = vpop.f32.mrf.mxu2  ;;  %v1281_v60 = vpop.f32.mrf.mxu3 }
 0x172   : > { %v1101_v28 = vrot.slane %v1051_v19, 4  ;;  %v1491_v30 = vpop.f32.mrf.mxu0 }
 0x173   : > { %v1508_v33 = vrot.slane %v1491_v30, 4 }
 0x174   : > { %v1133_v29 = vsel %vm674_vm0, 0.0, %v1101_v28 }
 0x175   : > { %v1192_v31 = vadd.f32 %v1133_v29, %v740_v56  ;;  %v744_v32 = vpop.f32.mrf.mxu1  ;;  %v1516_v25 = vsel %vm674_vm0, 0.0, %v1508_v33  ;;  %2032 = vmatmul.msk.bf16.gmra.mxu0 %vm441_vm1, %v2605_v63  ;;  %v738_v33 = vadd.f32 %v2751_v49, %v2634_v24 }
 0x176   : > { %v2783_v46 = vadd.f32 %v1516_v25, %v2648_v35  ;;  %v745_v53 = vadd.f32 %v744_v32, %v2634_v24 }
 0x177   : > { %1724 = vst [vmem:[%s2667_s3 + $0xa8] sm:$0xff] %v1192_v31 }
 0x179   : > { %v1053_v17 = vpop.f32.mrf.mxu2  ;;  %v1282_v34 = vpop.f32.mrf.mxu3 }
 0x17a   : > { %v1337_v52 = vrot.slane %v1282_v34, 4  ;;  %v1493_v4 = vpop.f32.mrf.mxu0  ;;  %v1329_v17 = vrot.slane %v2609_v2, 4 }
 0x17c   : > { %v1369_v61 = vsel %vm674_vm0, %v1337_v52, 0.0 }
 0x17d   : > { %v1425_v3 = vadd.f32 %v1369_v61, %v728_v57  ;;  %v2788_v62 = vpop.f32.mrf.mxu1  ;;  %v1361_v61 = vsel %vm674_vm0, %v1329_v17, 0.0 }
 0x17f   : > { %1719 = vst [vmem:[%s2667_s3 + $0x80] sm:$0xff] %v1425_v3 }
 0x181   : > { %v1055_v0 = vpop.f32.mrf.mxu2  ;;  %v1285_v7 = vpop.f32.mrf.mxu3 }
 0x182   : > { %v1102_v63 = vrot.slane %v1055_v0, 4  ;;  %v1495_v8 = vpop.f32.mrf.mxu0 }
 0x183   : > { %v1509_v58 = vrot.slane %v1495_v8, 4 }
 0x184   : > { %v1134_v35 = vsel %vm674_vm0, 0.0, %v1102_v63 }
 0x185   : > { %v1194_v9 = vadd.f32 %v1134_v35, %v745_v53  ;;  %v2793_v48 = vpop.f32.mrf.mxu1  ;;  %v1517_v10 = vsel %vm674_vm0, 0.0, %v1509_v58  ;;  %2033 = vmatmul.msk.bf16.gmra.mxu0 %vm441_vm1, %v2619_v6  ;;  %v743_v35 = vadd.f32 %v2773_v27, %v2634_v24  ;;  %v961_v27 = vrot.slane %v2693_v23, 4 }
 0x186   : > { %v2800_v40 = vadd.f32 %v1517_v10, %v2655_v11 }
 0x187   : > { %1726 = vst [vmem:[%s2667_s3 + $0xb8] sm:$0xff] %v1194_v9 }
 0x189   : > { %v1057_v43 = vpop.f32.mrf.mxu2  ;;  %v1286_v12 = vpop.f32.mrf.mxu3 }
 0x18a   : > { %v1338_v18 = vrot.slane %v1286_v12, 4  ;;  %v1497_v21 = vpop.f32.mrf.mxu0 }
 0x18c   : > { %v1370_v20 = vsel %vm674_vm0, %v1338_v18, 0.0  ;;  %v748_v18 = vadd.f32 %v2788_v62, %v2634_v24 }
 0x18d   : > { %v1427_v22 = vadd.f32 %v1370_v20, %v733_v14  ;;  %v2805_v19 = vpop.f32.mrf.mxu1 }
 0x18f   : > { %1721 = vst [vmem:[%s2667_s3 + $0x90] sm:$0xff] %v1427_v22  ;;  %v911_v22 = vadd.f32 %v2659_v44, %v748_v18 }
 0x191   : > { %v2808_v60 = vpop.f32.mrf.mxu2  ;;  %v1289_v28 = vpop.f32.mrf.mxu3 }
 0x192   : > { %v1499_v6 = vpop.f32.mrf.mxu0  ;;  %v1103_v44 = vrot.slane %v2808_v60, 4 }
 0x193   : > { %v1510_v11 = vrot.slane %v1499_v6, 4 }
 0x195   : > { %v2810_v56 = vpop.f32.mrf.mxu1  ;;  %v1518_v29 = vsel %vm674_vm0, 0.0, %v1510_v11  ;;  %2034 = vmatmul.msk.bf16.gmra.mxu0 %vm441_vm1, %v2653_v36  ;;  %v688_v36 = vadd.f32 %v2549_v37, %v2634_v24  ;;  %v969_v11 = vsel %vm674_vm0, %v961_v27, 0.0 }
 0x196   : > { %v2816_v31 = vadd.f32 %v1518_v29, %v2657_v41 }
 0x197   : > { %v1409_v49 = vadd.f32 %v1361_v61, %v688_v36 }
 0x199   : > { %v1061_v59 = vpop.f32.mrf.mxu2  ;;  %v1290_v30 = vpop.f32.mrf.mxu3 }
 0x19a   : > { %v1339_v32 = vrot.slane %v1290_v30, 4  ;;  %v1501_v34 = vpop.f32.mrf.mxu0  ;;  %v981_v59 = vadd.f32 %v969_v11, %v911_v22 }
 0x19c   : > { %v1371_v25 = vsel %vm674_vm0, %v1339_v32, 0.0 }
 0x19d   : > { %v1429_v52 = vadd.f32 %v1371_v25, %v738_v33  ;;  %v2822_v57 = vpop.f32.mrf.mxu1 }
 0x19f   : > { %1723 = vst [vmem:[%s2667_s3 + $0xa0] sm:$0xff] %v1429_v52 }
 0x1a1   : > { %v2828_v41 = vpop.f32.mrf.mxu2  ;;  %v1293_v4 = vpop.f32.mrf.mxu3 }
 0x1a2   : > { %v1557_v3 = vpop.f32.mrf.mxu0 }
 0x1a3   : > { %v2832_v2 = vadd.f32 %v1557_v3, %v1409_v49  ;;  %v1135_v49 = vsel %vm674_vm0, 0.0, %v1103_v44 }
 0x1a5   : > { %v2830_v0 = vpop.f32.mrf.mxu1 }
 0x1a9   : > { %v1065_v7 = vpop.f32.mrf.mxu2  ;;  %v1294_v63 = vpop.f32.mrf.mxu3 }
 0x1aa   : > { %v1340_v53 = vrot.slane %v1294_v63, 4  ;;  %v1559_v8 = vpop.f32.mrf.mxu0 }
 0x1ab   : > { %v1586_v10 = vadd.f32 %v1559_v8, %v2768_v13  ;;  %v835_v13 = vrot.slane %v2554_v38, 4  ;;  %v750_v38 = vadd.f32 %v2793_v48, %v2634_v24  ;;  %v962_v8 = vrot.slane %v2713_v55, 4 }
 0x1ac   : > { %v1372_v37 = vsel %vm674_vm0, %v1340_v53, 0.0 }
 0x1ad   : > { %v1431_v9 = vadd.f32 %v1372_v37, %v743_v35  ;;  %v2837_v58 = vpop.f32.mrf.mxu1  ;;  %1704 = vst [vmem:[%s2667_s3 + $0x8] sm:$0xff] %v1586_v10  ;;  %v843_v33 = vsel %vm674_vm0, 0.0, %v835_v13 }
 0x1af   : > { %1725 = vst [vmem:[%s2667_s3 + $0xb0] sm:$0xff] %v1431_v9 }
 0x1b1   : > { %v2842_v43 = vpop.f32.mrf.mxu2  ;;  %v1297_v12 = vpop.f32.mrf.mxu3 }
 0x1b2   : > { %v1562_v14 = vpop.f32.mrf.mxu0 }
 0x1b3   : > { %v2848_v21 = vadd.f32 %v1562_v14, %v2662_v51 }
 0x1b5   : > { %v764_v20 = vpop.f32.mrf.mxu1 }
 0x1b6   : > { %v765_v62 = vadd.f32 %v764_v20, %v2634_v24 }
 0x1b8   : > { %v860_v34 = vadd.f32 %v843_v33, %v765_v62 }
 0x1b9   : > { %v1069_v28 = vpop.f32.mrf.mxu2  ;;  %v1298_v6 = vpop.f32.mrf.mxu3 }
 0x1ba   : > { %v1341_v29 = vrot.slane %v1298_v6, 4  ;;  %v1564_v23 = vpop.f32.mrf.mxu0  ;;  %v918_v60 = vadd.f32 %v2593_v16, %v860_v34  ;;  %v755_v28 = vadd.f32 %v2810_v56, %v2634_v24 }
 0x1bb   : > { %v1588_v25 = vadd.f32 %v1564_v23, %v2783_v46  ;;  %v753_v46 = vadd.f32 %v2805_v19, %v2634_v24  ;;  %v963_v23 = vrot.slane %v2732_v15, 4  ;;  %v1105_v15 = vrot.slane %v2842_v43, 4 }
 0x1bc   : > { %v1373_v30 = vsel %vm674_vm0, %v1341_v29, 0.0 }
 0x1bd   : > { %v1433_v32 = vadd.f32 %v1373_v30, %v981_v59  ;;  %v812_v51 = vpop.f32.mrf.mxu1  ;;  %1706 = vst [vmem:[%s2667_s3 + $0x18] sm:$0xff] %v1588_v25  ;;  %v913_v10 = vadd.f32 %v2556_v39, %v753_v46  ;;  %v758_v59 = vadd.f32 %v2822_v57, %v2634_v24  ;;  %v971_v33 = vsel %vm674_vm0, %v963_v23, 0.0 }
 0x1be   : > { %v832_v17 = vrot.slane %v812_v51, 4 }
 0x1bf   : > { %1727 = vst [vmem:[%s2667_s3 + $0xc0] sm:$0xff] %v1433_v32  ;;  %v915_v32 = vadd.f32 %v2572_v47, %v758_v59  ;;  %v760_v47 = vadd.f32 %v2830_v0, %v2634_v24  ;;  %v964_v0 = vrot.slane %v2749_v45, 4 }
 0x1c0   : > { %v840_v52 = vsel %vm674_vm0, 0.0, %v832_v17 }
 0x1c1   : > { %v854_v36 = vadd.f32 %v840_v52, %v750_v38  ;;  %v1071_v61 = vpop.f32.mrf.mxu2  ;;  %v1301_v4 = vpop.f32.mrf.mxu3  ;;  %v985_v57 = vadd.f32 %v971_v33, %v915_v32 }
 0x1c2   : > { %v1106_v3 = vrot.slane %v1071_v61, 4  ;;  %v1567_v53 = vpop.f32.mrf.mxu0  ;;  %v1137_v4 = vsel %vm674_vm0, 0.0, %v1105_v15 }
 0x1c3   : > { %v912_v48 = vadd.f32 %v2673_v1, %v854_v36  ;;  %v2871_v9 = vadd.f32 %v1567_v53, %v2677_v5  ;;  %v970_v1 = vsel %vm674_vm0, %v962_v8, 0.0  ;;  %v1104_v5 = vrot.slane %v2828_v41, 4 }
 0x1c4   : > { %v1138_v7 = vsel %vm674_vm0, 0.0, %v1106_v3  ;;  %v983_v18 = vadd.f32 %v970_v1, %v913_v10 }
 0x1c5   : > { %v1196_v63 = vadd.f32 %v1135_v49, %v912_v48  ;;  %v1202_v35 = vadd.f32 %v1138_v7, %v918_v60  ;;  %v814_v37 = vpop.f32.mrf.mxu1  ;;  %v1136_v29 = vsel %vm674_vm0, 0.0, %v1104_v5  ;;  %v763_v49 = vadd.f32 %v2837_v58, %v2634_v24 }
 0x1c6   : > { %v972_v7 = vsel %vm674_vm0, %v964_v0, 0.0 }
 0x1c7   : > { %1728 = vst [vmem:[%s2667_s3 + $0xc8] sm:$0xff] %v1196_v63  ;;  %v917_v60 = vadd.f32 %v2586_v54, %v763_v49 }
 0x1c8   : > { %1734 = vst [vmem:[%s2667_s3 + $0xf8] sm:$0xff] %v1202_v35 }
 0x1c9   : > { %v1302_v16 = vpop.f32.mrf.mxu3  ;;  %v1073_v19 = vpop.f32.mrf.mxu2  ;;  %v987_v53 = vadd.f32 %v972_v7, %v917_v60 }
 0x1ca   : > { %v1342_v12 = vrot.slane %v1302_v16, 4  ;;  %v1569_v20 = vpop.f32.mrf.mxu0 }
 0x1cb   : > { %v1590_v22 = vadd.f32 %v1569_v20, %v2800_v40 }
 0x1cc   : > { %v1374_v14 = vsel %vm674_vm0, %v1342_v12, 0.0 }
 0x1cd   : > { %v1435_v27 = vadd.f32 %v1374_v14, %v983_v18  ;;  %v816_v55 = vpop.f32.mrf.mxu1  ;;  %1708 = vst [vmem:[%s2667_s3 + $0x28] sm:$0xff] %v1590_v22 }
 0x1ce   : > { %v833_v39 = vrot.slane %v816_v55, 4 }
 0x1cf   : > { %1729 = vst [vmem:[%s2667_s3 + $0xd0] sm:$0xff] %v1435_v27 }
 0x1d0   : > { %v841_v6 = vsel %vm674_vm0, 0.0, %v833_v39 }
 0x1d1   : > { %v856_v13 = vadd.f32 %v841_v6, %v755_v28  ;;  %v1305_v11 = vpop.f32.mrf.mxu3 }
 0x1d2   : > { %v1572_v40 = vpop.f32.mrf.mxu0 }
 0x1d3   : > { %v914_v41 = vadd.f32 %v2563_v42, %v856_v13  ;;  %v2891_v56 = vadd.f32 %v1572_v40, %v2697_v26 }
 0x1d5   : > { %v1198_v62 = vadd.f32 %v1136_v29, %v914_v41  ;;  %v818_v30 = vpop.f32.mrf.mxu1 }
 0x1d7   : > { %1730 = vst [vmem:[%s2667_s3 + $0xd8] sm:$0xff] %v1198_v62 }
 0x1d9   : > { %v1306_v51 = vpop.f32.mrf.mxu3 }
 0x1da   : > { %v1343_v44 = vrot.slane %v1306_v51, 4  ;;  %v1574_v25 = vpop.f32.mrf.mxu0 }
 0x1db   : > { %v1592_v34 = vadd.f32 %v1574_v25, %v2816_v31 }
 0x1dc   : > { %v1375_v42 = vsel %vm674_vm0, %v1343_v44, 0.0 }
 0x1dd   : > { %v1437_v17 = vadd.f32 %v1375_v42, %v985_v57  ;;  %v820_v38 = vpop.f32.mrf.mxu1  ;;  %1710 = vst [vmem:[%s2667_s3 + $0x38] sm:$0xff] %v1592_v34 }
 0x1de   : > { %v834_v26 = vrot.slane %v820_v38, 4 }
 0x1df   : > { %1731 = vst [vmem:[%s2667_s3 + $0xe0] sm:$0xff] %v1437_v17 }
 0x1e0   : > { %v842_v52 = vsel %vm674_vm0, 0.0, %v834_v26 }
 0x1e1   : > { %v858_v36 = vadd.f32 %v842_v52, %v760_v47  ;;  %v1309_v61 = vpop.f32.mrf.mxu3 }
 0x1e2   : > { %v1615_v3 = vpop.f32.mrf.mxu0 }
 0x1e3   : > { %v916_v43 = vadd.f32 %v2578_v50, %v858_v36 }
 0x1e5   : > { %v1200_v31 = vadd.f32 %v1137_v4, %v916_v43  ;;  %v822_v46 = vpop.f32.mrf.mxu1 }
 0x1e7   : > { %1732 = vst [vmem:[%s2667_s3 + $0xe8] sm:$0xff] %v1200_v31 }
 0x1e9   : > { %v1310_v48 = vpop.f32.mrf.mxu3 }
 0x1ea   : > { %v1344_v63 = vrot.slane %v1310_v48, 4  ;;  %v1616_v58 = vpop.f32.mrf.mxu0 }
 0x1eb   : > { %v1635_v50 = vrot.slane %v1616_v58, 4 }
 0x1ec   : > { %v1376_v24 = vsel %vm674_vm0, %v1344_v63, 0.0 }
 0x1ed   : > { %v1439_v35 = vadd.f32 %v1376_v24, %v987_v53  ;;  %v1643_v37 = vsel %vm674_vm0, %v1635_v50, 0.0 }
 0x1ee   : > { %v1655_v54 = vadd.f32 %v1643_v37, %v2832_v2 }
 0x1ef   : > { %1733 = vst [vmem:[%s2667_s3 + $0xf0] sm:$0xff] %v1439_v35 }
 0x1f0   : > { %1703 = vst [vmem:[%s2667_s3] sm:$0xff] %v1655_v54 }
 0x1f2   : > { %v1619_v45 = vpop.f32.mrf.mxu0 }
 0x1fa   : > { %v1620_v8 = vpop.f32.mrf.mxu0 }
 0x1fb   : > { %v1636_v10 = vrot.slane %v1620_v8, 4 }
 0x1fd   : > { %v1644_v16 = vsel %vm674_vm0, %v1636_v10, 0.0 }
 0x1fe   : > { %v1657_v19 = vadd.f32 %v1644_v16, %v2848_v21 }
 0x200   : > { %1705 = vst [vmem:[%s2667_s3 + $0x10] sm:$0xff] %v1657_v19 }
 0x202   : > { %v1623_v1 = vpop.f32.mrf.mxu0 }
 0x20a   : > { %v1624_v12 = vpop.f32.mrf.mxu0 }
 0x20b   : > { %v1637_v18 = vrot.slane %v1624_v12, 4 }
 0x20d   : > { %v1645_v14 = vsel %vm674_vm0, %v1637_v18, 0.0 }
 0x20e   : > { %v1659_v20 = vadd.f32 %v1645_v14, %v2871_v9 }
 0x210   : > { %1707 = vst [vmem:[%s2667_s3 + $0x20] sm:$0xff] %v1659_v20 }
 0x212   : > { %v1627_v2 = vpop.f32.mrf.mxu0 }
 0x21a   : > { %v1628_v21 = vpop.f32.mrf.mxu0 }
 0x21b   : > { %v1638_v27 = vrot.slane %v1628_v21, 4 }
 0x21d   : > { %v1646_v55 = vsel %vm674_vm0, %v1638_v27, 0.0 }
 0x21e   : > { %v1661_v9 = vadd.f32 %v1646_v55, %v2891_v56 }
 0x220   : > { %1709 = vst [vmem:[%s2667_s3 + $0x30] sm:$0xff] %v1661_v9 }
 0x221   : > { %2179 = shalt.err (!%p2176_p13)
}
 0x222   : > { %s2265_s17 = smov 128   ;;  %s2266_s3 = smov 256  }
 0x223   : > { %s2267_s29 = smov 8  }
 0x224   : > { %2059 = dma.vmem_to_hbm [thread:$0]  (%p2377_p10), %s1750_s10, 4096, %s1752_s9, %s1736_s23, %s2265_s17, %s2266_s3, %s2267_s29  }
 0x225 PF: > { %p2065_p0 = scmp.ge.s32.totalorder %s2262_s27, 2  ;;  %s1766_s13 = sand.u32 1, %s2226_s18  }
 0x226   : > { %s1767_s24 = scalar_lea.sflag [#allocation5], %s1766_s13 }
 0x227   : > { %p2062_p1 = pnand %p2065_p0, %p2384_p12 }
 0x229   : > { %p2063_p2 = pneg %p2062_p1 }
 0x22b   : > { %2221 = dma.done.wait (%p2063_p2), %s1767_s24, 4096  }
 0x22c   : > { %2223 = vsyncadd (%p2063_p2), %s1767_s24, 4294963200  ;;  %s18_s27 = sadd.s32 1, %s2262_s27   ;;  %s2989_s18 = smov %s2230_s19 }
 0x22d   : > { %p15_p3 = scmp.ge.s32.totalorder %s18_s27, 6   ;;  %s2990_s19 = smov %s2234_s20 }
 0x22e   : > { %s2991_s20 = smov %s2382_s15  ;;  %s2992_s21 = smov %s2242_s22 }
 0x22f   : > { %s2993_s22 = smov %s2371_s11  ;;  %s2994_s23 = smov %s2254_s25 }
 0x230   : > { %s2995_s24 = smov %s2258_s26  ;;  %s2996_s25 = smov %s2999_s30 }
 0x231   : > { %s2997_s26 = smov %s3003_s6  ;;  %17 = sbr.rel (!%p15_p3) target bundleno = 8 (0x8), region = 141 }
 0x236   :  { %1773 = vsyncpa [#allocation5], 1 }
 0x237   :  { %1775 = vsyncpa [#allocation5 + $0x1], 1 }

</bundles_post_ra>
